<compile_context>
chip_gen: v7x
topology: tpu7x:2x2x1
jax: 0.10.0
libtpu: 0.0.40
codegen_flags: <defaults>
</compile_context>

<pallas_src>
import functools
import math

import jax
import jax.numpy as jnp
from jax.experimental import pallas as pl
from jax.experimental.pallas import tpu as pltpu

_LN_EPS = 1e-5

_PARAM_ORDER = (
    "ln1_w", "ln1_b",
    "w_qkv", "b_qkv", "w_out", "b_out",
    "ln2_w", "ln2_b",
    "w_fc", "b_fc", "w_proj", "b_proj",
)
_MATMUL_WEIGHTS = ("w_qkv", "w_out", "w_fc", "w_proj")


def _erf(x):
    # Abramowitz & Stegun 7.1.26 rational approximation (|err| < 1.5e-7), so the
    # exact-GELU (erf) semantics of nn.GELU lower cleanly inside the kernel.
    a1, a2, a3, a4, a5 = 0.254829592, -0.284496736, 1.421413741, -1.453152027, 1.061405429
    p = 0.3275911
    sgn = jnp.where(x >= 0.0, 1.0, -1.0)
    ax = jnp.abs(x)
    t = 1.0 / (1.0 + p * ax)
    poly = t * (a1 + t * (a2 + t * (a3 + t * (a4 + t * a5))))
    return sgn * (1.0 - poly * jnp.exp(-ax * ax))


def _gelu_exact(x):
    return 0.5 * x * (1.0 + _erf(x * (1.0 / math.sqrt(2.0))))


def _layer_norm(v, w, b):
    mu = jnp.mean(v, axis=-1, keepdims=True)
    var = jnp.mean(jnp.square(v - mu), axis=-1, keepdims=True)
    return (v - mu) * jax.lax.rsqrt(var + _LN_EPS) * w + b


def _transformer_kernel(x_ref,
                        ln1w_ref, ln1b_ref,
                        wqkv_ref, bqkv_ref, wo_ref, bo_ref,
                        ln2w_ref, ln2b_ref,
                        wfc_ref, bfc_ref, wpr_ref, bpr_ref,
                        o_ref, act_ref,
                        *, n_head, block_batch, seq_len):
    # TODO(synk): attn_mask path not implemented (module default is attn_mask=None).
    n_layer = pl.num_programs(1)
    layer = pl.program_id(1)

    @pl.when(layer == 0)
    def _init():
        act_ref[...] = x_ref[...].astype(jnp.float32)

    x = act_ref[...]                              # (R, D) f32 residual stream
    R, D = x.shape
    H, L, Bn = n_head, seq_len, block_batch
    hd = D // H
    cdt = wqkv_ref.dtype                          # matmul compute dtype (bf16 / f32)
    scale = 1.0 / math.sqrt(hd)

    # ---- attention branch: x += out_proj(MHA(ln_1(x))) ----
    h = _layer_norm(x, ln1w_ref[0], ln1b_ref[0])
    qkv = jnp.dot(h.astype(cdt), wqkv_ref[0],
                  preferred_element_type=jnp.float32) + bqkv_ref[0]   # (R, 3D)
    q = (qkv[:, :D] * scale).astype(cdt)
    k = qkv[:, D:2 * D].astype(cdt)
    v = qkv[:, 2 * D:].astype(cdt)

    def split_heads(m):
        # (R, D) -> (Bn*H, L, hd) via static sublane/lane slices + leading-axis
        # concat (lowering-safe: no >2-D transpose needed).
        parts = []
        for b in range(Bn):
            rows = m[b * L:(b + 1) * L, :]
            for hh in range(H):
                parts.append(rows[:, hh * hd:(hh + 1) * hd].reshape(1, L, hd))
        return jnp.concatenate(parts, axis=0)

    qh, kh, vh = split_heads(q), split_heads(k), split_heads(v)

    # One batched MXU matmul over all (sequence, head) pairs for scores and P@V.
    s = jax.lax.dot_general(qh, kh, (((2,), (2,)), ((0,), (0,))),
                            preferred_element_type=jnp.float32)       # (Bn*H, L, L)
    s = s - jnp.max(s, axis=-1, keepdims=True)
    p = jnp.exp(s)
    p = p * pl.reciprocal(jnp.sum(p, axis=-1, keepdims=True), approx=True)
    ctx = jax.lax.dot_general(p.astype(cdt), vh, (((2,), (1,)), ((0,), (0,))),
                              preferred_element_type=jnp.float32)     # (Bn*H, L, hd)

    attn = jnp.concatenate(
        [jnp.concatenate([ctx[b * H + hh] for hh in range(H)], axis=-1)  # (L, D)
         for b in range(Bn)],
        axis=0)                                                          # (R, D)
    attn = jnp.dot(attn.astype(cdt), wo_ref[0],
                   preferred_element_type=jnp.float32) + bo_ref[0]
    x = x + attn

    # ---- MLP branch: x += c_proj(gelu(c_fc(ln_2(x)))) ----
    h2 = _layer_norm(x, ln2w_ref[0], ln2b_ref[0])
    m = jnp.dot(h2.astype(cdt), wfc_ref[0],
                preferred_element_type=jnp.float32) + bfc_ref[0]
    m = _gelu_exact(m)
    m = jnp.dot(m.astype(cdt), wpr_ref[0],
                preferred_element_type=jnp.float32) + bpr_ref[0]
    x = x + m

    act_ref[...] = x                              # carry residual stream to next layer

    @pl.when(layer == n_layer - 1)
    def _finalize():
        o_ref[...] = x.astype(o_ref.dtype)


def _choose_block_batch(n, l, min_rows=128):
    """Number of whole sequences per block; aims for >=128 rows per matmul tile."""
    ok = [c for c in range(1, n + 1)
          if n % c == 0 and (c == n or (c * l) % 8 == 0)]
    for c in ok:
        if c * l >= min_rows:
            return c
    return ok[-1]   # whole batch in one block


def transformer_forward(x_lnd, params, *, n_head, compute_dtype=jnp.bfloat16,
                        block_batch=None):
    """Matches Transformer.forward: x is (L, N, D) float32, returns (L, N, D)."""
    L, N, D = x_lnd.shape
    n_layers = len(params)
    assert D % n_head == 0

    if block_batch is None:
        block_batch = _choose_block_batch(N, L)
    assert N % block_batch == 0
    rows = block_batch * L

    # (L, N, D) -> (N*L, D): sequences become contiguous row groups so the kernel
    # runs LN / QKV / out-proj / MLP on wide, lane/sublane-dense row tiles.
    x = jnp.transpose(x_lnd, (1, 0, 2)).reshape(N * L, D).astype(jnp.float32)

    # Stack per-layer params along a leading layer axis so a single pallas_call
    # iterates layers on-chip; matmul weights are cast once to the compute dtype.
    stacked_list = []
    for name in _PARAM_ORDER:
        a = jnp.stack([lp[name] for lp in params], axis=0)
        if name in _MATMUL_WEIGHTS:
            a = a.astype(compute_dtype)
        stacked_list.append(a)

    def _pspec(arr):
        nd = arr.ndim
        blk = (1,) + arr.shape[1:]
        return pl.BlockSpec(blk, lambda b, l, _nd=nd: (l,) + (0,) * (_nd - 1))

    in_specs = ([pl.BlockSpec((rows, D), lambda b, l: (b, 0))]
                + [_pspec(a) for a in stacked_list])
    out_spec = pl.BlockSpec((rows, D), lambda b, l: (b, 0))

    # Explicit VMEM budget: double-buffered per-layer weights (for layer-l+1
    # prefetch) + activation carry + headroom, clamped below v7x's 64 MiB VMEM.
    per_layer_bytes = sum((a.size // n_layers) * a.dtype.itemsize for a in stacked_list)
    act_bytes = rows * D * 4
    vmem_limit = int(min(max(2 * per_layer_bytes + 8 * act_bytes + (16 << 20),
                             32 << 20),
                         60 << 20))

    out = pl.pallas_call(
        functools.partial(_transformer_kernel, n_head=n_head,
                          block_batch=block_batch, seq_len=L),
        out_shape=jax.ShapeDtypeStruct((N * L, D), jnp.float32),
        grid_spec=pltpu.PrefetchScalarGridSpec(
            num_scalar_prefetch=0,
            grid=(N // block_batch, n_layers),   # batch blocks outer, layers inner
            in_specs=in_specs,
            out_specs=out_spec,
            scratch_shapes=[pltpu.VMEM((rows, D), jnp.float32)],
        ),
        compiler_params=pltpu.CompilerParams(
            dimension_semantics=("parallel", "arbitrary"),
            vmem_limit_bytes=vmem_limit,
        ),
    )(x, *stacked_list)

    return jnp.transpose(out.reshape(N, L, D), (1, 0, 2)).astype(x_lnd.dtype)


def init_params(key, width, layers, heads, mlp_ratio=4.0):
    del heads  # head count only affects the forward split, not param shapes
    mlp_width = int(width * mlp_ratio)
    params = []
    for _ in range(layers):
        key, k0, k1, k2, k3, k4, k5, k6 = jax.random.split(key, 8)

        def nrm(k, shape, scale=0.05):
            return jax.random.normal(k, shape, jnp.float32) * scale

        params.append({
            "ln1_w": jnp.ones((1, width), jnp.float32),
            "ln1_b": jnp.zeros((1, width), jnp.float32),
            # Linear weights stored pre-transposed: (in_features, out_features)
            "w_qkv": nrm(k0, (width, 3 * width)),
            "b_qkv": nrm(k1, (1, 3 * width), 0.01),
            "w_out": nrm(k2, (width, width)),
            "b_out": jnp.zeros((1, width), jnp.float32),
            "ln2_w": jnp.ones((1, width), jnp.float32),
            "ln2_b": jnp.zeros((1, width), jnp.float32),
            "w_fc": nrm(k3, (width, mlp_width)),
            "b_fc": nrm(k4, (1, mlp_width), 0.01),
            "w_proj": nrm(k5, (mlp_width, width)),
            "b_proj": nrm(k6, (1, width), 0.01),
        })
    return params


def reference_forward(x_lnd, all_params, n_head):
    """Pure-JAX reference replicating the PyTorch module semantics (f32)."""
    x = jnp.transpose(x_lnd, (1, 0, 2)).astype(jnp.float32)
    N, L, D = x.shape
    hd = D // n_head

    def ln(v, w, b):
        mu = jnp.mean(v, -1, keepdims=True)
        var = jnp.mean((v - mu) ** 2, -1, keepdims=True)
        return (v - mu) / jnp.sqrt(var + _LN_EPS) * w + b

    for p in all_params:
        h = ln(x, p["ln1_w"][0], p["ln1_b"][0])
        qkv = h @ p["w_qkv"] + p["b_qkv"][0]
        q, k, v = jnp.split(qkv, 3, axis=-1)
        q = q.reshape(N, L, n_head, hd).transpose(0, 2, 1, 3) / math.sqrt(hd)
        k = k.reshape(N, L, n_head, hd).transpose(0, 2, 1, 3)
        v = v.reshape(N, L, n_head, hd).transpose(0, 2, 1, 3)
        s = jnp.einsum("bhqd,bhkd->bhqk", q, k)
        pw = jax.nn.softmax(s, axis=-1)
        a = jnp.einsum("bhqk,bhkd->bhqd", pw, v).transpose(0, 2, 1, 3).reshape(N, L, D)
        a = a @ p["w_out"] + p["b_out"][0]
        x = x + a
        h2 = ln(x, p["ln2_w"][0], p["ln2_b"][0])
        m = jax.nn.gelu(h2 @ p["w_fc"] + p["b_fc"][0], approximate=False)
        m = m @ p["w_proj"] + p["b_proj"][0]
        x = x + m
    return jnp.transpose(x, (1, 0, 2))


if __name__ == "__main__":
    # Small shapes implied by the module: seq L=8, batch N=2, width D=32,
    # heads=4, layers=2, mlp_ratio=4.0 (mlp_width=128).
    L, N, D, HEADS, LAYERS = 8, 2, 32, 4, 2

    key = jax.random.PRNGKey(0)
    kx, kp = jax.random.split(key)
    x = jax.random.normal(kx, (L, N, D), jnp.float32)
    params = init_params(kp, D, LAYERS, HEADS)

    ref = reference_forward(x, params, HEADS)

    # Exact-precision path (f32 matmuls): tight check against pure-JAX reference.
    fwd_f32 = jax.jit(functools.partial(transformer_forward, n_head=HEADS,
                                        compute_dtype=jnp.float32))
    out_f32 = jax.block_until_ready(fwd_f32(x, params))
    assert out_f32.shape == x.shape and out_f32.dtype == x.dtype
    err_f32 = float(jnp.max(jnp.abs(out_f32 - ref)))
    assert err_f32 < 2e-3, f"f32 path mismatch vs reference: {err_f32}"

    # Default fast path: bf16 MXU matmuls with f32 accumulation.
    fwd_bf16 = jax.jit(functools.partial(transformer_forward, n_head=HEADS,
                                         compute_dtype=jnp.bfloat16))
    out_bf16 = jax.block_until_ready(fwd_bf16(x, params))
    assert out_bf16.shape == x.shape and out_bf16.dtype == x.dtype
    err_bf16 = float(jnp.max(jnp.abs(out_bf16 - ref)))
    assert err_bf16 < 3e-2, f"bf16 path mismatch vs reference: {err_bf16}"

    print("KERNEL_OK")
</pallas_src>

<mosaic_0001>
module attributes {stable_mosaic.version = 11 : i64} {
  func.func @_transformer_kernel(%arg0: i32, %arg1: i32, %arg2: memref<16x32xf32, #tpu.memory_space<vmem>>, %arg3: memref<1x1x32xf32, #tpu.memory_space<vmem>>, %arg4: memref<1x1x32xf32, #tpu.memory_space<vmem>>, %arg5: memref<1x32x96xf32, #tpu.memory_space<vmem>>, %arg6: memref<1x1x96xf32, #tpu.memory_space<vmem>>, %arg7: memref<1x32x32xf32, #tpu.memory_space<vmem>>, %arg8: memref<1x1x32xf32, #tpu.memory_space<vmem>>, %arg9: memref<1x1x32xf32, #tpu.memory_space<vmem>>, %arg10: memref<1x1x32xf32, #tpu.memory_space<vmem>>, %arg11: memref<1x32x128xf32, #tpu.memory_space<vmem>>, %arg12: memref<1x1x128xf32, #tpu.memory_space<vmem>>, %arg13: memref<1x128x32xf32, #tpu.memory_space<vmem>>, %arg14: memref<1x1x32xf32, #tpu.memory_space<vmem>>, %arg15: memref<16x32xf32, #tpu.memory_space<vmem>>, %arg16: memref<16x32xf32, #tpu.memory_space<vmem>>) attributes {dimension_semantics = [#tpu.dimension_semantics<parallel>, #tpu.dimension_semantics<arbitrary>], iteration_bounds = array<i64: 1, 2>, scalar_prefetch = 0 : i64, scratch_operands = 1 : i64, tpu.core_type = #tpu.core_type<tc>, window_params = [{transform_indices = @transform_0, window_bounds = array<i64: 16, 32>}, {transform_indices = @transform_1, window_bounds = array<i64: 1, 1, 32>}, {transform_indices = @transform_2, window_bounds = array<i64: 1, 1, 32>}, {transform_indices = @transform_3, window_bounds = array<i64: 1, 32, 96>}, {transform_indices = @transform_4, window_bounds = array<i64: 1, 1, 96>}, {transform_indices = @transform_5, window_bounds = array<i64: 1, 32, 32>}, {transform_indices = @transform_6, window_bounds = array<i64: 1, 1, 32>}, {transform_indices = @transform_7, window_bounds = array<i64: 1, 1, 32>}, {transform_indices = @transform_8, window_bounds = array<i64: 1, 1, 32>}, {transform_indices = @transform_9, window_bounds = array<i64: 1, 32, 128>}, {transform_indices = @transform_10, window_bounds = array<i64: 1, 1, 128>}, {transform_indices = @transform_11, window_bounds = array<i64: 1, 128, 32>}, {transform_indices = @transform_12, window_bounds = array<i64: 1, 1, 32>}, {transform_indices = @transform_13, window_bounds = array<i64: 16, 32>}]} {
    %c0_i32 = arith.constant 0 : i32
    %0 = arith.cmpi eq, %arg1, %c0_i32 : i32
    %1 = arith.extui %0 : i1 to i32
    %c0_i32_0 = arith.constant 0 : i32
    %2 = arith.cmpi ne, %1, %c0_i32_0 : i32
    scf.if %2 {
      %c0_75 = arith.constant 0 : index
      %c0_76 = arith.constant 0 : index
      %224 = vector.load %arg2[%c0_75, %c0_76] : memref<16x32xf32, #tpu.memory_space<vmem>>, vector<16x32xf32>
      %c0_77 = arith.constant 0 : index
      %c0_78 = arith.constant 0 : index
      %225 = vector.load %arg16[%c0_77, %c0_78] : memref<16x32xf32, #tpu.memory_space<vmem>>, vector<16x32xf32>
      tpu.vector_store %arg16[%c0_77, %c0_78], %224 {strides = array<i32>} : memref<16x32xf32, #tpu.memory_space<vmem>>, vector<16x32xf32>,
    } else {
    }
    %c0 = arith.constant 0 : index
    %c0_1 = arith.constant 0 : index
    %3 = vector.load %arg16[%c0, %c0_1] : memref<16x32xf32, #tpu.memory_space<vmem>>, vector<16x32xf32>
    %c0_2 = arith.constant 0 : index
    %c0_3 = arith.constant 0 : index
    %c0_4 = arith.constant 0 : index
    %4 = vector.load %arg3[%c0_2, %c0_3, %c0_4] : memref<1x1x32xf32, #tpu.memory_space<vmem>>, vector<1x1x32xf32>
    %5 = vector.shape_cast %4 : vector<1x1x32xf32> to vector<1x32xf32>
    %c0_5 = arith.constant 0 : index
    %c0_6 = arith.constant 0 : index
    %c0_7 = arith.constant 0 : index
    %6 = vector.load %arg4[%c0_5, %c0_6, %c0_7] : memref<1x1x32xf32, #tpu.memory_space<vmem>>, vector<1x1x32xf32>
    %7 = vector.shape_cast %6 : vector<1x1x32xf32> to vector<1x32xf32>
    %cst = arith.constant dense<0.000000e+00> : vector<16xf32>
    %8 = vector.multi_reduction <add>, %3, %cst [1] : vector<16x32xf32> to vector<16xf32>
    %9 = vector.shape_cast %8 : vector<16xf32> to vector<16x1xf32>
    %cst_8 = arith.constant 3.200000e+01 : f32
    %10 = vector.broadcast %cst_8 : f32 to vector<16x1xf32>
    %11 = arith.divf %9, %10 : vector<16x1xf32>
    %12 = vector.broadcast %11 : vector<16x1xf32> to vector<16x32xf32>
    %13 = arith.subf %3, %12 : vector<16x32xf32>
    %14 = arith.mulf %13, %13 : vector<16x32xf32>
    %cst_9 = arith.constant dense<0.000000e+00> : vector<16xf32>
    %15 = vector.multi_reduction <add>, %14, %cst_9 [1] : vector<16x32xf32> to vector<16xf32>
    %16 = vector.shape_cast %15 : vector<16xf32> to vector<16x1xf32>
    %cst_10 = arith.constant 3.200000e+01 : f32
    %17 = vector.broadcast %cst_10 : f32 to vector<16x1xf32>
    %18 = arith.divf %16, %17 : vector<16x1xf32>
    %19 = vector.broadcast %11 : vector<16x1xf32> to vector<16x32xf32>
    %20 = arith.subf %3, %19 : vector<16x32xf32>
    %cst_11 = arith.constant 9.99999974E-6 : f32
    %21 = vector.broadcast %cst_11 : f32 to vector<16x1xf32>
    %22 = arith.addf %18, %21 : vector<16x1xf32>
    %23 = math.rsqrt %22 : vector<16x1xf32>
    %24 = vector.broadcast %23 : vector<16x1xf32> to vector<16x32xf32>
    %25 = arith.mulf %20, %24 : vector<16x32xf32>
    %26 = vector.broadcast %5 : vector<1x32xf32> to vector<16x32xf32>
    %27 = arith.mulf %25, %26 : vector<16x32xf32>
    %28 = vector.broadcast %7 : vector<1x32xf32> to vector<16x32xf32>
    %29 = arith.addf %27, %28 : vector<16x32xf32>
    %c0_12 = arith.constant 0 : index
    %c0_13 = arith.constant 0 : index
    %c0_14 = arith.constant 0 : index
    %30 = vector.load %arg5[%c0_12, %c0_13, %c0_14] : memref<1x32x96xf32, #tpu.memory_space<vmem>>, vector<1x32x96xf32>
    %31 = vector.shape_cast %30 : vector<1x32x96xf32> to vector<32x96xf32>
    %cst_15 = arith.constant dense<0.000000e+00> : vector<16x96xf32>
    %32 = tpu.matmul %29, %31, %cst_15 {dimension_numbers = #tpu.dot_dimension_numbers<[1], [0], [0], [1], [0, 0, 1, 1], [], []>} : vector<16x32xf32>, vector<32x96xf32>, vector<16x96xf32> -> vector<16x96xf32>
    %c0_16 = arith.constant 0 : index
    %c0_17 = arith.constant 0 : index
    %c0_18 = arith.constant 0 : index
    %33 = vector.load %arg6[%c0_16, %c0_17, %c0_18] : memref<1x1x96xf32, #tpu.memory_space<vmem>>, vector<1x1x96xf32>
    %34 = vector.shape_cast %33 : vector<1x1x96xf32> to vector<1x96xf32>
    %35 = vector.broadcast %34 : vector<1x96xf32> to vector<16x96xf32>
    %36 = arith.addf %32, %35 : vector<16x96xf32>
    %37 = vector.extract_strided_slice %36 {offsets = [0, 0], sizes = [16, 32], strides = [1, 1]} : vector<16x96xf32> to vector<16x32xf32>
    %cst_19 = arith.constant 0.353553385 : f32
    %38 = vector.broadcast %cst_19 : f32 to vector<16x32xf32>
    %39 = arith.mulf %37, %38 : vector<16x32xf32>
    %40 = vector.extract_strided_slice %36 {offsets = [0, 32], sizes = [16, 32], strides = [1, 1]} : vector<16x96xf32> to vector<16x32xf32>
    %41 = vector.extract_strided_slice %36 {offsets = [0, 64], sizes = [16, 32], strides = [1, 1]} : vector<16x96xf32> to vector<16x32xf32>
    %42 = vector.extract_strided_slice %39 {offsets = [0, 0], sizes = [8, 32], strides = [1, 1]} : vector<16x32xf32> to vector<8x32xf32>
    %43 = vector.extract_strided_slice %42 {offsets = [0, 0], sizes = [8, 8], strides = [1, 1]} : vector<8x32xf32> to vector<8x8xf32>
    %44 = vector.shape_cast %43 : vector<8x8xf32> to vector<1x8x8xf32>
    %45 = vector.extract_strided_slice %42 {offsets = [0, 8], sizes = [8, 8], strides = [1, 1]} : vector<8x32xf32> to vector<8x8xf32>
    %46 = vector.shape_cast %45 : vector<8x8xf32> to vector<1x8x8xf32>
    %47 = vector.extract_strided_slice %42 {offsets = [0, 16], sizes = [8, 8], strides = [1, 1]} : vector<8x32xf32> to vector<8x8xf32>
    %48 = vector.shape_cast %47 : vector<8x8xf32> to vector<1x8x8xf32>
    %49 = vector.extract_strided_slice %42 {offsets = [0, 24], sizes = [8, 8], strides = [1, 1]} : vector<8x32xf32> to vector<8x8xf32>
    %50 = vector.shape_cast %49 : vector<8x8xf32> to vector<1x8x8xf32>
    %51 = vector.extract_strided_slice %39 {offsets = [8, 0], sizes = [8, 32], strides = [1, 1]} : vector<16x32xf32> to vector<8x32xf32>
    %52 = vector.extract_strided_slice %51 {offsets = [0, 0], sizes = [8, 8], strides = [1, 1]} : vector<8x32xf32> to vector<8x8xf32>
    %53 = vector.shape_cast %52 : vector<8x8xf32> to vector<1x8x8xf32>
    %54 = vector.extract_strided_slice %51 {offsets = [0, 8], sizes = [8, 8], strides = [1, 1]} : vector<8x32xf32> to vector<8x8xf32>
    %55 = vector.shape_cast %54 : vector<8x8xf32> to vector<1x8x8xf32>
    %56 = vector.extract_strided_slice %51 {offsets = [0, 16], sizes = [8, 8], strides = [1, 1]} : vector<8x32xf32> to vector<8x8xf32>
    %57 = vector.shape_cast %56 : vector<8x8xf32> to vector<1x8x8xf32>
    %58 = vector.extract_strided_slice %51 {offsets = [0, 24], sizes = [8, 8], strides = [1, 1]} : vector<8x32xf32> to vector<8x8xf32>
    %59 = vector.shape_cast %58 : vector<8x8xf32> to vector<1x8x8xf32>
    %60 = tpu.concatenate %44, %46, %48, %50, %53, %55, %57, %59 in 0 : vector<1x8x8xf32>, vector<1x8x8xf32>, vector<1x8x8xf32>, vector<1x8x8xf32>, vector<1x8x8xf32>, vector<1x8x8xf32>, vector<1x8x8xf32>, vector<1x8x8xf32> -> vector<8x8x8xf32>
    %61 = vector.extract_strided_slice %40 {offsets = [0, 0], sizes = [8, 32], strides = [1, 1]} : vector<16x32xf32> to vector<8x32xf32>
    %62 = vector.extract_strided_slice %61 {offsets = [0, 0], sizes = [8, 8], strides = [1, 1]} : vector<8x32xf32> to vector<8x8xf32>
    %63 = vector.shape_cast %62 : vector<8x8xf32> to vector<1x8x8xf32>
    %64 = vector.extract_strided_slice %61 {offsets = [0, 8], sizes = [8, 8], strides = [1, 1]} : vector<8x32xf32> to vector<8x8xf32>
    %65 = vector.shape_cast %64 : vector<8x8xf32> to vector<1x8x8xf32>
    %66 = vector.extract_strided_slice %61 {offsets = [0, 16], sizes = [8, 8], strides = [1, 1]} : vector<8x32xf32> to vector<8x8xf32>
    %67 = vector.shape_cast %66 : vector<8x8xf32> to vector<1x8x8xf32>
    %68 = vector.extract_strided_slice %61 {offsets = [0, 24], sizes = [8, 8], strides = [1, 1]} : vector<8x32xf32> to vector<8x8xf32>
    %69 = vector.shape_cast %68 : vector<8x8xf32> to vector<1x8x8xf32>
    %70 = vector.extract_strided_slice %40 {offsets = [8, 0], sizes = [8, 32], strides = [1, 1]} : vector<16x32xf32> to vector<8x32xf32>
    %71 = vector.extract_strided_slice %70 {offsets = [0, 0], sizes = [8, 8], strides = [1, 1]} : vector<8x32xf32> to vector<8x8xf32>
    %72 = vector.shape_cast %71 : vector<8x8xf32> to vector<1x8x8xf32>
    %73 = vector.extract_strided_slice %70 {offsets = [0, 8], sizes = [8, 8], strides = [1, 1]} : vector<8x32xf32> to vector<8x8xf32>
    %74 = vector.shape_cast %73 : vector<8x8xf32> to vector<1x8x8xf32>
    %75 = vector.extract_strided_slice %70 {offsets = [0, 16], sizes = [8, 8], strides = [1, 1]} : vector<8x32xf32> to vector<8x8xf32>
    %76 = vector.shape_cast %75 : vector<8x8xf32> to vector<1x8x8xf32>
    %77 = vector.extract_strided_slice %70 {offsets = [0, 24], sizes = [8, 8], strides = [1, 1]} : vector<8x32xf32> to vector<8x8xf32>
    %78 = vector.shape_cast %77 : vector<8x8xf32> to vector<1x8x8xf32>
    %79 = tpu.concatenate %63, %65, %67, %69, %72, %74, %76, %78 in 0 : vector<1x8x8xf32>, vector<1x8x8xf32>, vector<1x8x8xf32>, vector<1x8x8xf32>, vector<1x8x8xf32>, vector<1x8x8xf32>, vector<1x8x8xf32>, vector<1x8x8xf32> -> vector<8x8x8xf32>
    %80 = vector.extract_strided_slice %41 {offsets = [0, 0], sizes = [8, 32], strides = [1, 1]} : vector<16x32xf32> to vector<8x32xf32>
    %81 = vector.extract_strided_slice %80 {offsets = [0, 0], sizes = [8, 8], strides = [1, 1]} : vector<8x32xf32> to vector<8x8xf32>
    %82 = vector.shape_cast %81 : vector<8x8xf32> to vector<1x8x8xf32>
    %83 = vector.extract_strided_slice %80 {offsets = [0, 8], sizes = [8, 8], strides = [1, 1]} : vector<8x32xf32> to vector<8x8xf32>
    %84 = vector.shape_cast %83 : vector<8x8xf32> to vector<1x8x8xf32>
    %85 = vector.extract_strided_slice %80 {offsets = [0, 16], sizes = [8, 8], strides = [1, 1]} : vector<8x32xf32> to vector<8x8xf32>
    %86 = vector.shape_cast %85 : vector<8x8xf32> to vector<1x8x8xf32>
    %87 = vector.extract_strided_slice %80 {offsets = [0, 24], sizes = [8, 8], strides = [1, 1]} : vector<8x32xf32> to vector<8x8xf32>
    %88 = vector.shape_cast %87 : vector<8x8xf32> to vector<1x8x8xf32>
    %89 = vector.extract_strided_slice %41 {offsets = [8, 0], sizes = [8, 32], strides = [1, 1]} : vector<16x32xf32> to vector<8x32xf32>
    %90 = vector.extract_strided_slice %89 {offsets = [0, 0], sizes = [8, 8], strides = [1, 1]} : vector<8x32xf32> to vector<8x8xf32>
    %91 = vector.shape_cast %90 : vector<8x8xf32> to vector<1x8x8xf32>
    %92 = vector.extract_strided_slice %89 {offsets = [0, 8], sizes = [8, 8], strides = [1, 1]} : vector<8x32xf32> to vector<8x8xf32>
    %93 = vector.shape_cast %92 : vector<8x8xf32> to vector<1x8x8xf32>
    %94 = vector.extract_strided_slice %89 {offsets = [0, 16], sizes = [8, 8], strides = [1, 1]} : vector<8x32xf32> to vector<8x8xf32>
    %95 = vector.shape_cast %94 : vector<8x8xf32> to vector<1x8x8xf32>
    %96 = vector.extract_strided_slice %89 {offsets = [0, 24], sizes = [8, 8], strides = [1, 1]} : vector<8x32xf32> to vector<8x8xf32>
    %97 = vector.shape_cast %96 : vector<8x8xf32> to vector<1x8x8xf32>
    %98 = tpu.concatenate %82, %84, %86, %88, %91, %93, %95, %97 in 0 : vector<1x8x8xf32>, vector<1x8x8xf32>, vector<1x8x8xf32>, vector<1x8x8xf32>, vector<1x8x8xf32>, vector<1x8x8xf32>, vector<1x8x8xf32>, vector<1x8x8xf32> -> vector<8x8x8xf32>
    %cst_20 = arith.constant dense<0.000000e+00> : vector<8x8x8xf32>
    %99 = tpu.matmul %60, %79, %cst_20 {dimension_numbers = #tpu.dot_dimension_numbers<[2], [2], [1], [1], [0, 0, 0, 1, 1, 1], [0], [0]>} : vector<8x8x8xf32>, vector<8x8x8xf32>, vector<8x8x8xf32> -> vector<8x8x8xf32>
    %cst_21 = arith.constant dense<0xFF800000> : vector<8x8xf32>
    %100 = vector.multi_reduction <maximumf>, %99, %cst_21 [2] : vector<8x8x8xf32> to vector<8x8xf32>
    %101 = vector.shape_cast %100 : vector<8x8xf32> to vector<8x8x1xf32>
    %102 = vector.broadcast %101 : vector<8x8x1xf32> to vector<8x8x8xf32>
    %103 = arith.subf %99, %102 : vector<8x8x8xf32>
    %104 = math.exp %103 : vector<8x8x8xf32>
    %cst_22 = arith.constant dense<0.000000e+00> : vector<8x8xf32>
    %105 = vector.multi_reduction <add>, %104, %cst_22 [2] : vector<8x8x8xf32> to vector<8x8xf32>
    %106 = vector.shape_cast %105 : vector<8x8xf32> to vector<8x8x1xf32>
    %107 = tpu.reciprocal %106 {approx = true} : vector<8x8x1xf32> -> vector<8x8x1xf32>
    %108 = vector.broadcast %107 : vector<8x8x1xf32> to vector<8x8x8xf32>
    %109 = arith.mulf %104, %108 : vector<8x8x8xf32>
    %cst_23 = arith.constant dense<0.000000e+00> : vector<8x8x8xf32>
    %110 = tpu.matmul %109, %98, %cst_23 {dimension_numbers = #tpu.dot_dimension_numbers<[2], [1], [1], [2], [0, 0, 0, 1, 1, 2], [0], [0]>} : vector<8x8x8xf32>, vector<8x8x8xf32>, vector<8x8x8xf32> -> vector<8x8x8xf32>
    %111 = vector.extract_strided_slice %110 {offsets = [0, 0, 0], sizes = [1, 8, 8], strides = [1, 1, 1]} : vector<8x8x8xf32> to vector<1x8x8xf32>
    %112 = vector.shape_cast %111 : vector<1x8x8xf32> to vector<8x8xf32>
    %113 = vector.extract_strided_slice %110 {offsets = [1, 0, 0], sizes = [1, 8, 8], strides = [1, 1, 1]} : vector<8x8x8xf32> to vector<1x8x8xf32>
    %114 = vector.shape_cast %113 : vector<1x8x8xf32> to vector<8x8xf32>
    %115 = vector.extract_strided_slice %110 {offsets = [2, 0, 0], sizes = [1, 8, 8], strides = [1, 1, 1]} : vector<8x8x8xf32> to vector<1x8x8xf32>
    %116 = vector.shape_cast %115 : vector<1x8x8xf32> to vector<8x8xf32>
    %117 = vector.extract_strided_slice %110 {offsets = [3, 0, 0], sizes = [1, 8, 8], strides = [1, 1, 1]} : vector<8x8x8xf32> to vector<1x8x8xf32>
    %118 = vector.shape_cast %117 : vector<1x8x8xf32> to vector<8x8xf32>
    %119 = tpu.concatenate %112, %114, %116, %118 in 1 : vector<8x8xf32>, vector<8x8xf32>, vector<8x8xf32>, vector<8x8xf32> -> vector<8x32xf32>
    %120 = vector.extract_strided_slice %110 {offsets = [4, 0, 0], sizes = [1, 8, 8], strides = [1, 1, 1]} : vector<8x8x8xf32> to vector<1x8x8xf32>
    %121 = vector.shape_cast %120 : vector<1x8x8xf32> to vector<8x8xf32>
    %122 = vector.extract_strided_slice %110 {offsets = [5, 0, 0], sizes = [1, 8, 8], strides = [1, 1, 1]} : vector<8x8x8xf32> to vector<1x8x8xf32>
    %123 = vector.shape_cast %122 : vector<1x8x8xf32> to vector<8x8xf32>
    %124 = vector.extract_strided_slice %110 {offsets = [6, 0, 0], sizes = [1, 8, 8], strides = [1, 1, 1]} : vector<8x8x8xf32> to vector<1x8x8xf32>
    %125 = vector.shape_cast %124 : vector<1x8x8xf32> to vector<8x8xf32>
    %126 = vector.extract_strided_slice %110 {offsets = [7, 0, 0], sizes = [1, 8, 8], strides = [1, 1, 1]} : vector<8x8x8xf32> to vector<1x8x8xf32>
    %127 = vector.shape_cast %126 : vector<1x8x8xf32> to vector<8x8xf32>
    %128 = tpu.concatenate %121, %123, %125, %127 in 1 : vector<8x8xf32>, vector<8x8xf32>, vector<8x8xf32>, vector<8x8xf32> -> vector<8x32xf32>
    %129 = tpu.concatenate %119, %128 in 0 : vector<8x32xf32>, vector<8x32xf32> -> vector<16x32xf32>
    %c0_24 = arith.constant 0 : index
    %c0_25 = arith.constant 0 : index
    %c0_26 = arith.constant 0 : index
    %130 = vector.load %arg7[%c0_24, %c0_25, %c0_26] : memref<1x32x32xf32, #tpu.memory_space<vmem>>, vector<1x32x32xf32>
    %131 = vector.shape_cast %130 : vector<1x32x32xf32> to vector<32x32xf32>
    %cst_27 = arith.constant dense<0.000000e+00> : vector<16x32xf32>
    %132 = tpu.matmul %129, %131, %cst_27 {dimension_numbers = #tpu.dot_dimension_numbers<[1], [0], [0], [1], [0, 0, 1, 1], [], []>} : vector<16x32xf32>, vector<32x32xf32>, vector<16x32xf32> -> vector<16x32xf32>
    %c0_28 = arith.constant 0 : index
    %c0_29 = arith.constant 0 : index
    %c0_30 = arith.constant 0 : index
    %133 = vector.load %arg8[%c0_28, %c0_29, %c0_30] : memref<1x1x32xf32, #tpu.memory_space<vmem>>, vector<1x1x32xf32>
    %134 = vector.shape_cast %133 : vector<1x1x32xf32> to vector<1x32xf32>
    %135 = vector.broadcast %134 : vector<1x32xf32> to vector<16x32xf32>
    %136 = arith.addf %132, %135 : vector<16x32xf32>
    %137 = arith.addf %3, %136 : vector<16x32xf32>
    %c0_31 = arith.constant 0 : index
    %c0_32 = arith.constant 0 : index
    %c0_33 = arith.constant 0 : index
    %138 = vector.load %arg9[%c0_31, %c0_32, %c0_33] : memref<1x1x32xf32, #tpu.memory_space<vmem>>, vector<1x1x32xf32>
    %139 = vector.shape_cast %138 : vector<1x1x32xf32> to vector<1x32xf32>
    %c0_34 = arith.constant 0 : index
    %c0_35 = arith.constant 0 : index
    %c0_36 = arith.constant 0 : index
    %140 = vector.load %arg10[%c0_34, %c0_35, %c0_36] : memref<1x1x32xf32, #tpu.memory_space<vmem>>, vector<1x1x32xf32>
    %141 = vector.shape_cast %140 : vector<1x1x32xf32> to vector<1x32xf32>
    %cst_37 = arith.constant dense<0.000000e+00> : vector<16xf32>
    %142 = vector.multi_reduction <add>, %137, %cst_37 [1] : vector<16x32xf32> to vector<16xf32>
    %143 = vector.shape_cast %142 : vector<16xf32> to vector<16x1xf32>
    %cst_38 = arith.constant 3.200000e+01 : f32
    %144 = vector.broadcast %cst_38 : f32 to vector<16x1xf32>
    %145 = arith.divf %143, %144 : vector<16x1xf32>
    %146 = vector.broadcast %145 : vector<16x1xf32> to vector<16x32xf32>
    %147 = arith.subf %137, %146 : vector<16x32xf32>
    %148 = arith.mulf %147, %147 : vector<16x32xf32>
    %cst_39 = arith.constant dense<0.000000e+00> : vector<16xf32>
    %149 = vector.multi_reduction <add>, %148, %cst_39 [1] : vector<16x32xf32> to vector<16xf32>
    %150 = vector.shape_cast %149 : vector<16xf32> to vector<16x1xf32>
    %cst_40 = arith.constant 3.200000e+01 : f32
    %151 = vector.broadcast %cst_40 : f32 to vector<16x1xf32>
    %152 = arith.divf %150, %151 : vector<16x1xf32>
    %153 = vector.broadcast %145 : vector<16x1xf32> to vector<16x32xf32>
    %154 = arith.subf %137, %153 : vector<16x32xf32>
    %cst_41 = arith.constant 9.99999974E-6 : f32
    %155 = vector.broadcast %cst_41 : f32 to vector<16x1xf32>
    %156 = arith.addf %152, %155 : vector<16x1xf32>
    %157 = math.rsqrt %156 : vector<16x1xf32>
    %158 = vector.broadcast %157 : vector<16x1xf32> to vector<16x32xf32>
    %159 = arith.mulf %154, %158 : vector<16x32xf32>
    %160 = vector.broadcast %139 : vector<1x32xf32> to vector<16x32xf32>
    %161 = arith.mulf %159, %160 : vector<16x32xf32>
    %162 = vector.broadcast %141 : vector<1x32xf32> to vector<16x32xf32>
    %163 = arith.addf %161, %162 : vector<16x32xf32>
    %c0_42 = arith.constant 0 : index
    %c0_43 = arith.constant 0 : index
    %c0_44 = arith.constant 0 : index
    %164 = vector.load %arg11[%c0_42, %c0_43, %c0_44] : memref<1x32x128xf32, #tpu.memory_space<vmem>>, vector<1x32x128xf32>
    %165 = vector.shape_cast %164 : vector<1x32x128xf32> to vector<32x128xf32>
    %cst_45 = arith.constant dense<0.000000e+00> : vector<16x128xf32>
    %166 = tpu.matmul %163, %165, %cst_45 {dimension_numbers = #tpu.dot_dimension_numbers<[1], [0], [0], [1], [0, 0, 1, 1], [], []>} : vector<16x32xf32>, vector<32x128xf32>, vector<16x128xf32> -> vector<16x128xf32>
    %c0_46 = arith.constant 0 : index
    %c0_47 = arith.constant 0 : index
    %c0_48 = arith.constant 0 : index
    %167 = vector.load %arg12[%c0_46, %c0_47, %c0_48] : memref<1x1x128xf32, #tpu.memory_space<vmem>>, vector<1x1x128xf32>
    %168 = vector.shape_cast %167 : vector<1x1x128xf32> to vector<1x128xf32>
    %169 = vector.broadcast %168 : vector<1x128xf32> to vector<16x128xf32>
    %170 = arith.addf %166, %169 : vector<16x128xf32>
    %cst_49 = arith.constant 5.000000e-01 : f32
    %171 = vector.broadcast %cst_49 : f32 to vector<16x128xf32>
    %172 = arith.mulf %171, %170 : vector<16x128xf32>
    %cst_50 = arith.constant 0.707106769 : f32
    %173 = vector.broadcast %cst_50 : f32 to vector<16x128xf32>
    %174 = arith.mulf %170, %173 : vector<16x128xf32>
    %cst_51 = arith.constant 0.000000e+00 : f32
    %175 = vector.broadcast %cst_51 : f32 to vector<16x128xf32>
    %176 = arith.cmpf oge, %174, %175 : vector<16x128xf32>
    %cst_52 = arith.constant 1.000000e+00 : f32
    %cst_53 = arith.constant -1.000000e+00 : f32
    %177 = vector.broadcast %cst_52 : f32 to vector<16x128xf32>
    %178 = vector.broadcast %cst_53 : f32 to vector<16x128xf32>
    %179 = arith.select %176, %177, %178 : vector<16x128xi1>, vector<16x128xf32>
    %180 = math.absf %174 : vector<16x128xf32>
    %cst_54 = arith.constant 0.327591091 : f32
    %181 = vector.broadcast %cst_54 : f32 to vector<16x128xf32>
    %182 = arith.mulf %181, %180 : vector<16x128xf32>
    %cst_55 = arith.constant 1.000000e+00 : f32
    %183 = vector.broadcast %cst_55 : f32 to vector<16x128xf32>
    %184 = arith.addf %183, %182 : vector<16x128xf32>
    %cst_56 = arith.constant 1.000000e+00 : f32
    %185 = vector.broadcast %cst_56 : f32 to vector<16x128xf32>
    %186 = arith.divf %185, %184 : vector<16x128xf32>
    %cst_57 = arith.constant 1.06140542 : f32
    %187 = vector.broadcast %cst_57 : f32 to vector<16x128xf32>
    %188 = arith.mulf %186, %187 : vector<16x128xf32>
    %cst_58 = arith.constant -1.45315206 : f32
    %189 = vector.broadcast %cst_58 : f32 to vector<16x128xf32>
    %190 = arith.addf %189, %188 : vector<16x128xf32>
    %191 = arith.mulf %186, %190 : vector<16x128xf32>
    %cst_59 = arith.constant 1.42141378 : f32
    %192 = vector.broadcast %cst_59 : f32 to vector<16x128xf32>
    %193 = arith.addf %192, %191 : vector<16x128xf32>
    %194 = arith.mulf %186, %193 : vector<16x128xf32>
    %cst_60 = arith.constant -0.284496725 : f32
    %195 = vector.broadcast %cst_60 : f32 to vector<16x128xf32>
    %196 = arith.addf %195, %194 : vector<16x128xf32>
    %197 = arith.mulf %186, %196 : vector<16x128xf32>
    %cst_61 = arith.constant 0.254829586 : f32
    %198 = vector.broadcast %cst_61 : f32 to vector<16x128xf32>
    %199 = arith.addf %198, %197 : vector<16x128xf32>
    %200 = arith.mulf %186, %199 : vector<16x128xf32>
    %cst_62 = arith.constant 0.000000e+00 : f32
    %201 = vector.broadcast %cst_62 : f32 to vector<16x128xf32>
    %202 = arith.subf %201, %180 : vector<16x128xf32>
    %203 = arith.mulf %202, %180 : vector<16x128xf32>
    %204 = math.exp %203 : vector<16x128xf32>
    %205 = arith.mulf %200, %204 : vector<16x128xf32>
    %cst_63 = arith.constant 1.000000e+00 : f32
    %206 = vector.broadcast %cst_63 : f32 to vector<16x128xf32>
    %207 = arith.subf %206, %205 : vector<16x128xf32>
    %208 = arith.mulf %179, %207 : vector<16x128xf32>
    %cst_64 = arith.constant 1.000000e+00 : f32
    %209 = vector.broadcast %cst_64 : f32 to vector<16x128xf32>
    %210 = arith.addf %209, %208 : vector<16x128xf32>
    %211 = arith.mulf %172, %210 : vector<16x128xf32>
    %c0_65 = arith.constant 0 : index
    %c0_66 = arith.constant 0 : index
    %c0_67 = arith.constant 0 : index
    %212 = vector.load %arg13[%c0_65, %c0_66, %c0_67] : memref<1x128x32xf32, #tpu.memory_space<vmem>>, vector<1x128x32xf32>
    %213 = vector.shape_cast %212 : vector<1x128x32xf32> to vector<128x32xf32>
    %cst_68 = arith.constant dense<0.000000e+00> : vector<16x32xf32>
    %214 = tpu.matmul %211, %213, %cst_68 {dimension_numbers = #tpu.dot_dimension_numbers<[1], [0], [0], [1], [0, 0, 1, 1], [], []>} : vector<16x128xf32>, vector<128x32xf32>, vector<16x32xf32> -> vector<16x32xf32>
    %c0_69 = arith.constant 0 : index
    %c0_70 = arith.constant 0 : index
    %c0_71 = arith.constant 0 : index
    %215 = vector.load %arg14[%c0_69, %c0_70, %c0_71] : memref<1x1x32xf32, #tpu.memory_space<vmem>>, vector<1x1x32xf32>
    %216 = vector.shape_cast %215 : vector<1x1x32xf32> to vector<1x32xf32>
    %217 = vector.broadcast %216 : vector<1x32xf32> to vector<16x32xf32>
    %218 = arith.addf %214, %217 : vector<16x32xf32>
    %219 = arith.addf %137, %218 : vector<16x32xf32>
    %c0_72 = arith.constant 0 : index
    %c0_73 = arith.constant 0 : index
    %220 = vector.load %arg16[%c0_72, %c0_73] : memref<16x32xf32, #tpu.memory_space<vmem>>, vector<16x32xf32>
    tpu.vector_store %arg16[%c0_72, %c0_73], %219 {strides = array<i32>} : memref<16x32xf32, #tpu.memory_space<vmem>>, vector<16x32xf32>,
    %c1_i32 = arith.constant 1 : i32
    %221 = arith.cmpi eq, %arg1, %c1_i32 : i32
    %222 = arith.extui %221 : i1 to i32
    %c0_i32_74 = arith.constant 0 : i32
    %223 = arith.cmpi ne, %222, %c0_i32_74 : i32
    scf.if %223 {
      %c0_75 = arith.constant 0 : index
      %c0_76 = arith.constant 0 : index
      %224 = vector.load %arg15[%c0_75, %c0_76] : memref<16x32xf32, #tpu.memory_space<vmem>>, vector<16x32xf32>
      tpu.vector_store %arg15[%c0_75, %c0_76], %219 {strides = array<i32>} : memref<16x32xf32, #tpu.memory_space<vmem>>, vector<16x32xf32>,
    } else {
    }
    return
  }
  func.func @transform_0(%arg0: i32, %arg1: i32) -> (i32, i32) {
    %c0_i32 = arith.constant 0 : i32
    %c0_i32_0 = arith.constant 0 : i32
    return %arg0, %c0_i32 : i32, i32
  }
  func.func @transform_1(%arg0: i32, %arg1: i32) -> (i32, i32, i32) {
    %c0_i32 = arith.constant 0 : i32
    %c0_i32_0 = arith.constant 0 : i32
    %c0_i32_1 = arith.constant 0 : i32
    return %arg1, %c0_i32, %c0_i32_0 : i32, i32, i32
  }
  func.func @transform_2(%arg0: i32, %arg1: i32) -> (i32, i32, i32) {
    %c0_i32 = arith.constant 0 : i32
    %c0_i32_0 = arith.constant 0 : i32
    %c0_i32_1 = arith.constant 0 : i32
    return %arg1, %c0_i32, %c0_i32_0 : i32, i32, i32
  }
  func.func @transform_3(%arg0: i32, %arg1: i32) -> (i32, i32, i32) {
    %c0_i32 = arith.constant 0 : i32
    %c0_i32_0 = arith.constant 0 : i32
    %c0_i32_1 = arith.constant 0 : i32
    return %arg1, %c0_i32, %c0_i32_0 : i32, i32, i32
  }
  func.func @transform_4(%arg0: i32, %arg1: i32) -> (i32, i32, i32) {
    %c0_i32 = arith.constant 0 : i32
    %c0_i32_0 = arith.constant 0 : i32
    %c0_i32_1 = arith.constant 0 : i32
    return %arg1, %c0_i32, %c0_i32_0 : i32, i32, i32
  }
  func.func @transform_5(%arg0: i32, %arg1: i32) -> (i32, i32, i32) {
    %c0_i32 = arith.constant 0 : i32
    %c0_i32_0 = arith.constant 0 : i32
    %c0_i32_1 = arith.constant 0 : i32
    return %arg1, %c0_i32, %c0_i32_0 : i32, i32, i32
  }
  func.func @transform_6(%arg0: i32, %arg1: i32) -> (i32, i32, i32) {
    %c0_i32 = arith.constant 0 : i32
    %c0_i32_0 = arith.constant 0 : i32
    %c0_i32_1 = arith.constant 0 : i32
    return %arg1, %c0_i32, %c0_i32_0 : i32, i32, i32
  }
  func.func @transform_7(%arg0: i32, %arg1: i32) -> (i32, i32, i32) {
    %c0_i32 = arith.constant 0 : i32
    %c0_i32_0 = arith.constant 0 : i32
    %c0_i32_1 = arith.constant 0 : i32
    return %arg1, %c0_i32, %c0_i32_0 : i32, i32, i32
  }
  func.func @transform_8(%arg0: i32, %arg1: i32) -> (i32, i32, i32) {
    %c0_i32 = arith.constant 0 : i32
    %c0_i32_0 = arith.constant 0 : i32
    %c0_i32_1 = arith.constant 0 : i32
    return %arg1, %c0_i32, %c0_i32_0 : i32, i32, i32
  }
  func.func @transform_9(%arg0: i32, %arg1: i32) -> (i32, i32, i32) {
    %c0_i32 = arith.constant 0 : i32
    %c0_i32_0 = arith.constant 0 : i32
    %c0_i32_1 = arith.constant 0 : i32
    return %arg1, %c0_i32, %c0_i32_0 : i32, i32, i32
  }
  func.func @transform_10(%arg0: i32, %arg1: i32) -> (i32, i32, i32) {
    %c0_i32 = arith.constant 0 : i32
    %c0_i32_0 = arith.constant 0 : i32
    %c0_i32_1 = arith.constant 0 : i32
    return %arg1, %c0_i32, %c0_i32_0 : i32, i32, i32
  }
  func.func @transform_11(%arg0: i32, %arg1: i32) -> (i32, i32, i32) {
    %c0_i32 = arith.constant 0 : i32
    %c0_i32_0 = arith.constant 0 : i32
    %c0_i32_1 = arith.constant 0 : i32
    return %arg1, %c0_i32, %c0_i32_0 : i32, i32, i32
  }
  func.func @transform_12(%arg0: i32, %arg1: i32) -> (i32, i32, i32) {
    %c0_i32 = arith.constant 0 : i32
    %c0_i32_0 = arith.constant 0 : i32
    %c0_i32_1 = arith.constant 0 : i32
    return %arg1, %c0_i32, %c0_i32_0 : i32, i32, i32
  }
  func.func @transform_13(%arg0: i32, %arg1: i32) -> (i32, i32) {
    %c0_i32 = arith.constant 0 : i32
    %c0_i32_0 = arith.constant 0 : i32
    return %arg0, %c0_i32 : i32, i32
  }
}

</mosaic_0001>

<bundles_post_ra>
// kernel: transformer_forward.1
= control target key start
LH: loop header
LB: loop body
LE: loop exit
PB: predicated region body
PF: predicated region fallthrough
CT: control target
= control target key end

     0   :  { %s3262_s25 = smov 0   ;;  %s3264_s26 = smov 0   ;;  %s3623_s0 = inlined_call_operand.vmem [shape: f32[16,32], index: 0, kind: input, shape index: {}]   ;;  %s3624_s1 = inlined_call_operand.vmem [shape: f32[2,1,32], index: 1, kind: input, shape index: {}]   ;;  %s3625_s2 = inlined_call_operand.vmem [shape: f32[2,1,32], index: 2, kind: input, shape index: {}]   ;;  %s3626_s3 = inlined_call_operand.vmem [shape: f32[2,32,96], index: 3, kind: input, shape index: {}]   ;;  %s3627_s4 = inlined_call_operand.vmem [shape: f32[2,1,96], index: 4, kind: input, shape index: {}]   ;;  %s3628_s5 = inlined_call_operand.vmem [shape: f32[2,32,32], index: 5, kind: input, shape index: {}]   ;;  %s3629_s6 = inlined_call_operand.vmem [shape: f32[2,1,32], index: 6, kind: input, shape index: {}]   ;;  %s3630_s7 = inlined_call_operand.vmem [shape: f32[2,1,32], index: 7, kind: input, shape index: {}]   ;;  %s3631_s8 = inlined_call_operand.vmem [shape: f32[2,1,32], index: 8, kind: input, shape index: {}]   ;;  %s3632_s9 = inlined_call_operand.vmem [shape: f32[2,32,128], index: 9, kind: input, shape index: {}]   ;;  %s3633_s10 = inlined_call_operand.vmem [shape: f32[2,1,128], index: 10, kind: input, shape index: {}]   ;;  %s3634_s11 = inlined_call_operand.vmem [shape: f32[2,128,32], index: 11, kind: input, shape index: {}]   ;;  %s3635_s12 = inlined_call_operand.vmem [shape: f32[2,1,32], index: 12, kind: input, shape index: {}]   ;;  %s3636_s13 = inlined_call_operand.vmem [shape: f32[16,32], index: 13, kind: output, shape index: {}]  }
   0x1   :  { %3641 = sst [smem:[#allocation7_spill]] %s3626_s3  ;;  %s3266_s27 = smov 0  }
   0x2   :  { %3642 = sst [smem:[#allocation8_spill]] %s3628_s5 }
   0x3   :  { %3643 = sst [smem:[#allocation9_spill]] %s3636_s13 }
   0x4 LB: > { %3644 = sst [smem:[#allocation3_spill]] %s3175_s26  ;;  %s32_s28 = sadd.s32 1, %s3175_s26  ;;  %s3179_s27 = sphi %s3266_s27, %s23_s27   ;;  %s3175_s26 = sphi %s3264_s26, %s3658_s26   ;;  %s3171_s25 = sphi %s3262_s25, %s3657_s25  }
   0x5   : > { %3645 = sst [smem:[#allocation4_spill]] %s3179_s27  ;;  %p2745_p0 = scmp.ge.s32.totalorder %s3179_s27, 1 }
   0x6   : > { %p33_p1 = scmp.ge.s32.totalorder %s32_s28, 2  ;;  %p504_p2 = scmp.lt.s32.totalorder %s3179_s27, 3 }
   0x8   : > { %s3660_s28 = smov (%p33_p1, %s32_s28), 0  ;;  %p505_p3 = pnand %p2745_p0, %p504_p2 }
   0x9   : > { %3646 = sst [smem:[#allocation5_spill]] %s3660_s28 }
   0xa   : > { %508 = sbr.rel (%p505_p3) target bundleno = 2681 (0xa79), region = 72 }
  0x11   : > { %p598_p4 = scmp.lt.s32.totalorder %s3171_s25, 1  ;;  %s3647_s3 = sld [smem:[#allocation7_spill]] }
  0x12   : > { %s3648_s5 = sld [smem:[#allocation8_spill]]  ;;  %p2754_p5 = scmp.ne.s32.totalorder %s3171_s25, 0 }
  0x13   : > { %s3284_s29 = scalar_select %p598_p4, %s3171_s25, 1 }
  0x14   : > { %651 = sbr.rel (%p2754_p5) target bundleno = 27 (0x1b), region = 76  ;;  %v652_v0 = vld [vmem:[%s3623_s0] sm:$0xff] (!%p2754_p5)  ;;  %vm654_vm0 = vcmask (!%p2754_p5), 261120   ;;  %v653_v1 = vld [vmem:[%s3623_s0 + $0x8] sm:$0xff] (!%p2754_p5) }
  0x15   : > { %s2798_s19 = sshll.u32 %s3284_s29, 5  ;;  %s622_s13 = scalar_lea.vmem %s3630_s7, %s3284_s29  ;;  %655 = vst.msk [vmem:[#allocation2] sm:$0xff] (!%p2754_p5), %vm654_vm0, %v652_v0  ;;  %656 = vst.msk [vmem:[#allocation2 + $0x8] sm:$0xff] (!%p2754_p5), %vm654_vm0, %v653_v1 }
  0x16   : > { %s625_s22 = scalar_lea.vmem %s3631_s8, %s3284_s29  ;;  %s641_s20 = scalar_lea.vmem %s3635_s12, %s3284_s29 }
  0x17   : > { %s3302_s30 = scalar_lea.vmem %s3647_s3, %s2798_s19  ;;  %s3324_s3 = scalar_lea.vmem %s3632_s9, %s2798_s19 }
  0x18   : > { %s3307_s26 = scalar_lea.vmem %s3648_s5, %s2798_s19  ;;  %s633_s5 = scalar_lea.vmem %s3633_s10, %s3284_s29 }
  0x19   : > { %3649 = sst [smem:[#allocation6_spill]] %s3307_s26  ;;  %s2801_s26 = sshll.u32 %s3284_s29, 7 }
  0x1a   : > { %s3334_s16 = scalar_lea.vmem %s3634_s11, %s2801_s26 }
  0x1b PF: > { %vm661_vm1 = vcmask 261120   ;;  %v705_v16 = vld [vmem:[%s3302_s30] sm:$0xff]  ;;  %v706_v17 = vld [vmem:[%s3302_s30 + $0x8] sm:$0xff]  ;;  %v707_v18 = vld [vmem:[%s3302_s30 + $0x10] sm:$0xff]  ;;  %s3651_s15 = scalar_lea.vmem %s3625_s2, %s3284_s29  ;;  %v3181_v38 = vmov 0.0   ;;  %s3652_s21 = scalar_lea.vmem %s3627_s4, %s3284_s29  ;;  %vm3182_vm2 = vmmov 0  }
  0x1c   : > { %v3347_v2 = vld [vmem:[#allocation2] sm:$0xff]  ;;  %v3349_v3 = vld [vmem:[#allocation2 + $0x8] sm:$0xff]  ;;  %v3018_v19 = vpack.c.bf16 %v706_v17, %v705_v16  ;;  %v708_v20 = vld [vmem:[%s3302_s30 + $0x18] sm:$0xff]  ;;  %s3650_s30 = scalar_lea.vmem %s3624_s1, %s3284_s29  ;;  %2891 = vmatprep.subr.mxu0 %v3181_v38  ;;  %2893 = vmatprep.mubr.msk.f32.mxu0 %vm3182_vm2, %v3181_v38  ;;  %s3183_s19 = smov 112   ;;  %vm829_vm3 = vcmask 64512   ;;  %vm2145_vm4 = vcmask 130048  }
  0x1d   : > { %v662_v4 = vsel %vm661_vm1, %v3347_v2, 0.0  ;;  %v665_v5 = vsel %vm661_vm1, %v3349_v3, 0.0  ;;  %v3022_v21 = vpack.c.bf16 %v708_v20, %v707_v18  ;;  %v2755_v29 = vld [vmem:[%s3650_s30] ss:$0 sm:$0xff]  ;;  %s3184_s23 = smov 120   ;;  %s3185_s24 = smov 104  }
  0x1e   : > { %663 = vadd.xlane.f32.xlu0 %v662_v4  ;;  %3019 = vmatprep.subr.bf16.mxu1 %v3018_v19  ;;  %v2756_v31 = vld [vmem:[%s3651_s15] ss:$0 sm:$0xff]  ;;  %s3186_s26 = smov 96   ;;  %s3187_s28 = smov 64   ;;  %vm2147_vm5 = vcmask 195584  }
  0x1f   : > { %3021 = vmatpush3.bf16.msra.mxu1 %v3018_v19  ;;  %v2757_v39 = vld [vmem:[%s3652_s21] ss:$0 sm:$0xff]  ;;  %s3653_s30 = sld [smem:[#allocation6_spill]]  ;;  %s3188_s14 = smov 8  }
  0x20   : > { %3023 = vmatprep.subr.bf16.mxu1 %v3022_v21  ;;  %s3189_s27 = smov 16   ;;  %s3190_s15 = smov 24  }
  0x21   : > { %s3654_s21 = scalar_lea.vmem %s3629_s6, %s3284_s29  ;;  %p2793_p6 = scmp.ne.s32.totalorder %s3171_s25, 1 }
  0x22   : > { %666 = vadd.xlane.f32.xlu0 %v665_v5  ;;  %s3655_s29 = sld [smem:[#allocation9_spill]] (!%p2793_p6) }
  0x23   : > { %3025 = vmatpush3.bf16.msra.mxu1 %v3022_v21 }
  0x24   : > { %2881 = vmatprep.subr.mxu1 %v3181_v38 }
  0xab   : > { %v664_v6 = vpop.xlane.xlu0 %663 }
  0xac   : > { %v669_v7 = vmul.f32 0.03125, %v664_v6 }
  0xae   : > { %v671_v8 = vsub.f32 %v3347_v2, %v669_v7 }
  0xaf   : > { %v667_v9 = vpop.xlane.xlu0 %666 }
  0xb0   : > { %v670_v10 = vmul.f32 0.03125, %v667_v9  ;;  %v673_v11 = vmul.f32 %v671_v8, %v671_v8 }
  0xb2   : > { %v672_v12 = vsub.f32 %v3349_v3, %v670_v10  ;;  %v675_v13 = vsel %vm661_vm1, %v673_v11, 0.0 }
  0xb3   : > { %676 = vadd.xlane.f32.xlu1 %v675_v13 }
  0xb4   : > { %v674_v14 = vmul.f32 %v672_v12, %v672_v12 }
  0xb6   : > { %v678_v15 = vsel %vm661_vm1, %v674_v14, 0.0 }
  0xb7   : > { %679 = vadd.xlane.f32.xlu1 %v678_v15 }
 0x140   : > { %v677_v22 = vpop.xlane.xlu1 %676 }
 0x141   : > { %v681_v23 = vmul.f32 0.03125, %v677_v22 }
 0x143   : > { %v683_v24 = vadd.f32 1e-05, %v681_v23 }
 0x144   : > { %v680_v25 = vpop.xlane.xlu1 %679 }
 0x145   : > { %3109 = vrsqrt.f32 %v683_v24  ;;  %v682_v26 = vmul.f32 0.03125, %v680_v25 }
 0x147   : > { %v684_v27 = vadd.f32 1e-05, %v682_v26 }
 0x149   : > { %3111 = vrsqrt.f32 %v684_v27 }
 0x14f   : > { %v3110_v28 = vpop.eup %3109 }
 0x150   : > { %v687_v30 = vmul.f32 %v3110_v28, %v671_v8 }
 0x152   : > { %v695_v32 = vmul.f32 %v2755_v29, %v687_v30 }
 0x153   : > { %v3112_v33 = vpop.eup %3111 }
 0x154   : > { %v688_v34 = vmul.f32 %v3112_v33, %v672_v12  ;;  %v703_v35 = vadd.f32 %v2756_v31, %v695_v32 }
 0x156   : > { %v696_v36 = vmul.f32 %v2755_v29, %v688_v34  ;;  %2878 = vmatprep.mubr.msk.f32.mxu1 %vm661_vm1, %v703_v35 }
 0x158   : > { %v704_v37 = vadd.f32 %v2756_v31, %v696_v36 }
 0x15a   : > { %2879 = vmatmul.mubr.msk.f32.vlgmr.msra.gmra.mrb[0].mxu1 %vm661_vm1, %v704_v37 }
 0x15b   : > { %2883 = vmatprep.mubr.msk.f32.mxu1 %vm3182_vm2, %v3181_v38 }
 0x22d   : > { %v2880_v40 = vpop.f32.mrb[0].mxu1 }
 0x22e   : > { %v788_v41 = vpop.f32.mrb[1].mxu1  ;;  %v3391_v43 = vadd.f32 %v2880_v40, %v2757_v39 }
 0x22f   : > { %v3386_v42 = vadd.f32 %v2757_v39, %v788_v41 }
 0x230   : > { %v798_v49 = vmul.f32 0.35355338, %v3391_v43 }
 0x231   : > { %816 = vrot.lane.b32.xlu1 %v3386_v42, %s3183_s19  ;;  %814 = vrot.lane.b32.xlu0 %v3386_v42, %s3184_s23  ;;  %v797_v44 = vmul.f32 0.35355338, %v3386_v42 }
 0x235   : > { %818 = vrot.lane.b32.xlu1 %v3386_v42, %s3185_s24  ;;  %823 = vrot.lane.b32.xlu0 %v3391_v43, %s3183_s19 }
 0x239   : > { %821 = vrot.lane.b32.xlu1 %v3391_v43, %s3184_s23  ;;  %827 = vrot.lane.b32.xlu0 %v3386_v42, %s3186_s26 }
 0x23d   : > { %825 = vrot.lane.b32.xlu1 %v3391_v43, %s3185_s24  ;;  %800 = vrot.lane.b32.xlu0 %v797_v44, %s3184_s23 }
 0x241   : > { %1132 = vrot.lane.b32.xlu1 %v3391_v43, %s3186_s26  ;;  %804 = vrot.lane.b32.xlu0 %v797_v44, %s3185_s24 }
 0x245   : > { %802 = vrot.lane.b32.xlu1 %v797_v44, %s3183_s19 }
 0x2a3   : > { %v3405_v45 = vpop.permute.xlu1 %816  ;;  %v3407_v46 = vpop.permute.xlu0 %814 }
 0x2a4   : > { %904 = vrot.lane.b32.xlu1 %v3407_v46, %s3186_s26 }
 0x2a7   : > { %v3410_v47 = vpop.permute.xlu1 %818  ;;  %v3412_v48 = vpop.permute.xlu0 %823 }
 0x2a8   : > { %980 = vrot.lane.b32.xlu1 %v3405_v45, %s3186_s26  ;;  %1056 = vrot.lane.b32.xlu0 %v3410_v47, %s3186_s26 }
 0x2ab   : > { %v3417_v50 = vpop.permute.xlu1 %821  ;;  %v828_v51 = vpop.permute.xlu0 %827 }
 0x2ac   : > { %2882 = vmatpush3.xpose.msk.msra.mxu1 %vm829_vm3, %v828_v51  ;;  %807 = vrot.lane.b32.xlu1 %v798_v49, %s3184_s23 }
 0x2ad   : > { %1208 = vrot.lane.b32.xlu0 %v3417_v50, %s3186_s26  ;;  %2886 = vmatprep.subr.mxu1 %v3181_v38 }
 0x2af   : > { %v3422_v52 = vpop.permute.xlu1 %825  ;;  %2884 = vmatmul.mubr.msk.f32.vlgmr.msra.gmra.mrb[2].mxu1 %vm829_vm3, %v797_v44  ;;  %v801_v54 = vpop.permute.xlu0 %800 }
 0x2b0   : > { %1360 = vrot.lane.b32.xlu1 %v3422_v52, %s3186_s26  ;;  %2888 = vmatprep.mubr.msk.f32.mxu1 %vm3182_vm2, %v3181_v38 }
 0x2b1   : > { %1284 = vrot.lane.b32.xlu0 %v3412_v48, %s3186_s26 }
 0x2b3   : > { %v1133_v53 = vpop.permute.xlu1 %1132  ;;  %v805_v56 = vpop.permute.xlu0 %804 }
 0x2b4   : > { %811 = vrot.lane.b32.xlu1 %v798_v49, %s3185_s24 }
 0x2b5   : > { %809 = vrot.lane.b32.xlu0 %v798_v49, %s3183_s19 }
 0x2b7   : > { %v803_v55 = vpop.permute.xlu1 %802 }
 0x316   : > { %v905_v57 = vpop.permute.xlu1 %904 }
 0x317   : > { %2887 = vmatpush3.xpose.msk.msra.mxu1 %vm829_vm3, %v905_v57 }
 0x318   : > { %2896 = vmatprep.subr.mxu1 %v3181_v38 }
 0x31a   : > { %v981_v58 = vpop.permute.xlu1 %980  ;;  %v1057_v59 = vpop.permute.xlu0 %1056  ;;  %2889 = vmatmul.mubr.msk.f32.vlgmr.msra.gmra.mrb[4].mxu1 %vm829_vm3, %v801_v54 }
 0x31b   : > { %2892 = vmatpush3.xpose.msk.msra.mxu0 %vm829_vm3, %v981_v58  ;;  %2897 = vmatpush3.xpose.msk.msra.mxu1 %vm829_vm3, %v1057_v59 }
 0x31c   : > { %2898 = vmatprep.mubr.msk.f32.mxu1 %vm3182_vm2, %v3181_v38  ;;  %2901 = vmatprep.subr.mxu0 %v3181_v38 }
 0x31d   : > { %2906 = vmatprep.subr.mxu1 %v3181_v38 }
 0x31e   : > { %2894 = vmatmul.mubr.msk.f32.vlgmr.msra.gmra.mrb[0].mxu0 %vm829_vm3, %v803_v55  ;;  %v808_v60 = vpop.permute.xlu1 %807  ;;  %2899 = vmatmul.mubr.msk.f32.vlgmr.msra.gmra.mrb[6].mxu1 %vm829_vm3, %v805_v56 }
 0x31f   : > { %v1209_v61 = vpop.permute.xlu0 %1208  ;;  %2902 = vmatpush3.xpose.msk.msra.mxu0 %vm829_vm3, %v1133_v53  ;;  %2903 = vmatprep.mubr.msk.f32.mxu0 %vm3182_vm2, %v3181_v38 }
 0x320   : > { %2907 = vmatpush3.xpose.msk.msra.mxu1 %vm829_vm3, %v1209_v61  ;;  %2908 = vmatprep.mubr.msk.f32.mxu1 %vm3182_vm2, %v3181_v38 }
 0x321   : > { %2911 = vmatprep.subr.mxu0 %v3181_v38  ;;  %2916 = vmatprep.subr.mxu1 %v3181_v38 }
 0x322   : > { %2904 = vmatmul.mubr.msk.f32.vlgmr.msra.gmra.mrb[2].mxu0 %vm829_vm3, %v798_v49  ;;  %v1361_v62 = vpop.permute.xlu1 %1360 }
 0x323   : > { %v1285_v63 = vpop.permute.xlu0 %1284  ;;  %2909 = vmatmul.mubr.msk.f32.vlgmr.msra.gmra.mrb[8].mxu1 %vm829_vm3, %v808_v60  ;;  %2913 = vmatprep.mubr.msk.f32.mxu0 %vm3182_vm2, %v3181_v38 }
 0x324   : > { %2912 = vmatpush3.xpose.msk.msra.mxu0 %vm829_vm3, %v1285_v63  ;;  %2917 = vmatpush3.xpose.msk.msra.mxu1 %vm829_vm3, %v1361_v62 }
 0x325   : > { %2918 = vmatprep.mubr.msk.f32.mxu1 %vm3182_vm2, %v3181_v38  ;;  %2926 = vmatprep.subr.mxu1 %v3181_v38 }
 0x326   : > { %v812_v0 = vpop.permute.xlu1 %811  ;;  %2921 = vmatprep.subr.mxu0 %v3181_v38 }
 0x327   : > { %v810_v1 = vpop.permute.xlu0 %809  ;;  %2919 = vmatmul.mubr.msk.f32.vlgmr.msra.gmra.mrb[10].mxu1 %vm829_vm3, %v812_v0 }
 0x328   : > { %2914 = vmatmul.mubr.msk.f32.vlgmr.msra.gmra.mrb[4].mxu0 %vm829_vm3, %v810_v1  ;;  %2928 = vmatprep.mubr.msk.f32.mxu1 %vm3182_vm2, %v3181_v38 }
 0x329   : > { %2923 = vmatprep.mubr.msk.f32.mxu0 %vm3182_vm2, %v3181_v38 }
 0x382   : > { %v900_v4 = vpop.f32.mrb[2].mxu1 }
 0x383   : > { %v2885_v5 = vpop.f32.mrb[3].mxu1  ;;  %v1436_v6 = vsel %vm829_vm3, %v900_v4, -inf }
 0x384   : > { %1437 = vmax.xlane.f32.xlu0 %v1436_v6 }
 0x3ed   : > { %v976_v7 = vpop.f32.mrb[4].mxu1 }
 0x3ee   : > { %v2890_v8 = vpop.f32.mrb[5].mxu1  ;;  %v1439_v9 = vsel %vm829_vm3, %v976_v7, -inf }
 0x3ef   : > { %1440 = vmax.xlane.f32.xlu1 %v1439_v9 }
 0x3f1   : > { %v1052_v10 = vpop.f32.mrb[0].mxu0  ;;  %v1128_v11 = vpop.f32.mrb[6].mxu1 }
 0x3f2   : > { %v2895_v12 = vpop.f32.mrb[1].mxu0  ;;  %v2900_v13 = vpop.f32.mrb[7].mxu1  ;;  %v1442_v14 = vsel %vm829_vm3, %v1052_v10, -inf  ;;  %v1445_v18 = vsel %vm829_vm3, %v1128_v11, -inf }
 0x3f3   : > { %1443 = vmax.xlane.f32.xlu0 %v1442_v14 }
 0x3f5   : > { %v1204_v15 = vpop.f32.mrb[2].mxu0 }
 0x3f6   : > { %v1280_v16 = vpop.f32.mrb[8].mxu1  ;;  %v2905_v17 = vpop.f32.mrb[3].mxu0  ;;  %v1448_v22 = vsel %vm829_vm3, %v1204_v15, -inf }
 0x3f7   : > { %v2910_v19 = vpop.f32.mrb[9].mxu1  ;;  %1446 = vmax.xlane.f32.xlu0 %v1445_v18  ;;  %v1451_v20 = vsel %vm829_vm3, %v1280_v16, -inf }
 0x3f8   : > { %1452 = vmax.xlane.f32.xlu1 %v1451_v20 }
 0x3fa   : > { %v1432_v21 = vpop.f32.mrb[10].mxu1 }
 0x3fb   : > { %v1356_v23 = vpop.f32.mrb[4].mxu0  ;;  %1449 = vmax.xlane.f32.xlu0 %v1448_v22  ;;  %v2920_v24 = vpop.f32.mrb[11].mxu1  ;;  %v1457_v25 = vsel %vm829_vm3, %v1432_v21, -inf }
 0x3fc   : > { %v2915_v26 = vpop.f32.mrb[5].mxu0  ;;  %1458 = vmax.xlane.f32.xlu1 %v1457_v25  ;;  %v1454_v27 = vsel %vm829_vm3, %v1356_v23, -inf }
 0x3ff   : > { %1455 = vmax.xlane.f32.xlu0 %v1454_v27 }
 0x40d   : > { %1600 = vrot.lane.b32.xlu1 %v3407_v46, %s3187_s28 }
 0x411   : > { %1676 = vrot.lane.b32.xlu1 %v3405_v45, %s3187_s28  ;;  %v1438_v28 = vpop.xlane.xlu0 %1437 }
 0x412   : > { %v1460_v29 = vsub.f32 %v900_v4, %v1438_v28 }
 0x414   : > { %v1468_v30 = vmul.f32 1.442695, %v1460_v29 }
 0x415   : > { %1524 = vrot.lane.b32.xlu0 %v3386_v42, %s3187_s28  ;;  %1752 = vrot.lane.b32.xlu1 %v3410_v47, %s3187_s28 }
 0x416   : > { %3113 = vpow2.f32 %v1468_v30 }
 0x419   : > { %1828 = vrot.lane.b32.xlu0 %v3391_v43, %s3187_s28  ;;  %1904 = vrot.lane.b32.xlu1 %v3417_v50, %s3187_s28 }
 0x420   : > { %v3486_v31 = vpop.eup %3113 }
 0x421   : > { %v1484_v32 = vsel %vm829_vm3, %v3486_v31, 0.0 }
 0x438   : > { %1485 = vadd.xlane.f32.xlu0 %v1484_v32 }
 0x47c   : > { %v1441_v33 = vpop.xlane.xlu1 %1440 }
 0x47d   : > { %v1461_v34 = vsub.f32 %v976_v7, %v1441_v33 }
 0x47f   : > { %v1470_v35 = vmul.f32 1.442695, %v1461_v34 }
 0x480   : > { %v1444_v36 = vpop.xlane.xlu0 %1443 }
 0x481   : > { %3115 = vpow2.f32 %v1470_v35  ;;  %v1462_v37 = vsub.f32 %v1052_v10, %v1444_v36 }
 0x483   : > { %v1472_v39 = vmul.f32 1.442695, %v1462_v37 }
 0x484   : > { %v1447_v40 = vpop.xlane.xlu0 %1446 }
 0x485   : > { %3117 = vpow2.f32 %v1472_v39  ;;  %v1463_v41 = vsub.f32 %v1128_v11, %v1447_v40  ;;  %v1453_v42 = vpop.xlane.xlu1 %1452 }
 0x486   : > { %v1465_v43 = vsub.f32 %v1280_v16, %v1453_v42  ;;  %v2164_v42 = vld [vmem:[%s3653_s30] sm:$0xff] }
 0x487   : > { %v1474_v44 = vmul.f32 1.442695, %v1463_v41 }
 0x488   : > { %v1478_v45 = vmul.f32 1.442695, %v1465_v43  ;;  %v1450_v46 = vpop.xlane.xlu0 %1449  ;;  %v2165_v43 = vld [vmem:[%s3653_s30 + $0x8] sm:$0xff] }
 0x489   : > { %3119 = vpow2.f32 %v1474_v44  ;;  %v1464_v47 = vsub.f32 %v1204_v15, %v1450_v46  ;;  %v1459_v49 = vpop.xlane.xlu1 %1458  ;;  %v3026_v44 = vpack.c.bf16 %v2165_v43, %v2164_v42  ;;  %v2787_v42 = vld [vmem:[%s622_s13] ss:$0 sm:$0xff] }
 0x48a   : > { %v1467_v50 = vsub.f32 %v1432_v21, %v1459_v49  ;;  %3121 = vpow2.f32 %v1478_v45  ;;  %v2167_v49 = vld [vmem:[%s3653_s30 + $0x18] sm:$0xff] }
 0x48b   : > { %v3116_v51 = vpop.eup %3115  ;;  %v1476_v53 = vmul.f32 1.442695, %v1464_v47  ;;  %v2166_v47 = vld [vmem:[%s3653_s30 + $0x10] sm:$0xff] }
 0x48c   : > { %v1482_v54 = vmul.f32 1.442695, %v1467_v50  ;;  %v1456_v55 = vpop.xlane.xlu0 %1455  ;;  %v1487_v56 = vsel %vm829_vm3, %v3116_v51, 0.0  ;;  %v3030_v50 = vpack.c.bf16 %v2167_v49, %v2166_v47 }
 0x48d   : > { %3123 = vpow2.f32 %v1476_v53  ;;  %v1466_v57 = vsub.f32 %v1356_v23, %v1456_v55  ;;  %1488 = vadd.xlane.f32.xlu1 %v1487_v56  ;;  %v1601_v58 = vpop.permute.xlu1 %1600 }
 0x48e   : > { %2927 = vmatpush3.msra.mxu1 %v1601_v58  ;;  %3125 = vpow2.f32 %v1482_v54 }
 0x48f   : > { %v3118_v59 = vpop.eup %3117  ;;  %v1480_v60 = vmul.f32 1.442695, %v1466_v57  ;;  %2936 = vmatprep.subr.mxu1 %v3181_v38 }
 0x490   : > { %v1525_v61 = vpop.permute.xlu0 %1524  ;;  %v1490_v62 = vsel %vm829_vm3, %v3118_v59, 0.0 }
 0x491   : > { %3127 = vpow2.f32 %v1480_v60  ;;  %1491 = vadd.xlane.f32.xlu0 %v1490_v62  ;;  %2922 = vmatpush3.msra.mxu0 %v1525_v61  ;;  %v1677_v15 = vpop.permute.xlu1 %1676 }
 0x492   : > { %2931 = vmatprep.subr.mxu0 %v3181_v38 }
 0x493   : > { %v3120_v63 = vpop.eup %3119 }
 0x494   : > { %v1493_v0 = vsel %vm829_vm3, %v3120_v63, 0.0  ;;  %v3122_v1 = vpop.eup %3121  ;;  %v1829_v11 = vpop.permute.xlu0 %1828 }
 0x495   : > { %1494 = vadd.xlane.f32.xlu1 %v1493_v0  ;;  %v1499_v6 = vsel %vm829_vm3, %v3122_v1, 0.0  ;;  %v1753_v16 = vpop.permute.xlu1 %1752 }
 0x497   : > { %v3124_v4 = vpop.eup %3123 }
 0x498   : > { %v1496_v5 = vsel %vm829_vm3, %v3124_v4, 0.0  ;;  %v3497_v7 = vpop.eup %3125 }
 0x499   : > { %1497 = vadd.xlane.f32.xlu0 %v1496_v5  ;;  %1500 = vadd.xlane.f32.xlu1 %v1499_v6  ;;  %v1505_v10 = vsel %vm829_vm3, %v3497_v7, 0.0 }
 0x49b   : > { %v3128_v8 = vpop.eup %3127 }
 0x49c   : > { %v1502_v9 = vsel %vm829_vm3, %v3128_v8, 0.0 }
 0x49d   : > { %1503 = vadd.xlane.f32.xlu0 %v1502_v9  ;;  %1506 = vadd.xlane.f32.xlu1 %v1505_v10 }
 0x4ae   : > { %2056 = vrot.lane.b32.xlu1 %v3422_v52, %s3187_s28  ;;  %v1905_v52 = vpop.permute.xlu1 %1904 }
 0x4b3   : > { %1980 = vrot.lane.b32.xlu0 %v3412_v48, %s3187_s28 }
 0x4c5   : > { %v1486_v12 = vpop.xlane.xlu0 %1485 }
 0x4c6   : > { %3129 = vrcp.f32 %v1486_v12 }
 0x4d0   : > { %v3130_v13 = vpop.eup %3129 }
 0x4d1   : > { %v1516_v14 = vmul.f32 %v3130_v13, %v3486_v31  ;;  %v2784_v13 = vld [vmem:[%s3654_s21] ss:$0 sm:$0xff] }
 0x4d3   : > { %2924 = vmatmul.mubr.msk.f32.vlgmr.msra.gmra.mrb[6].mxu0 %vm829_vm3, %v1516_v14 }
 0x4d4   : > { %2932 = vmatpush3.msra.mxu0 %v1677_v15  ;;  %2933 = vmatprep.mubr.msk.f32.mxu0 %vm3182_vm2, %v3181_v38 }
 0x4d5   : > { %2941 = vmatprep.subr.mxu0 %v3181_v38 }
 0x51a   : > { %v1489_v17 = vpop.xlane.xlu1 %1488 }
 0x51b   : > { %3131 = vrcp.f32 %v1489_v17 }
 0x51e   : > { %v1492_v48 = vpop.xlane.xlu0 %1491 }
 0x51f   : > { %3133 = vrcp.f32 %v1492_v48 }
 0x522   : > { %v1495_v18 = vpop.xlane.xlu1 %1494 }
 0x523   : > { %3135 = vrcp.f32 %v1495_v18 }
 0x525   : > { %v3132_v19 = vpop.eup %3131 }
 0x526   : > { %v1517_v20 = vmul.f32 %v3132_v19, %v3116_v51  ;;  %v1498_v21 = vpop.xlane.xlu0 %1497  ;;  %v1501_v22 = vpop.xlane.xlu1 %1500 }
 0x527   : > { %3137 = vrcp.f32 %v1498_v21 }
 0x528   : > { %3139 = vrcp.f32 %v1501_v22  ;;  %2929 = vmatmul.mubr.msk.f32.vlgmr.msra.gmra.mrb[12].mxu1 %vm829_vm3, %v1517_v20 }
 0x529   : > { %v3134_v23 = vpop.eup %3133  ;;  %2937 = vmatpush3.msra.mxu1 %v1753_v16  ;;  %2938 = vmatprep.mubr.msk.f32.mxu1 %vm3182_vm2, %v3181_v38 }
 0x52a   : > { %v1518_v24 = vmul.f32 %v3134_v23, %v3118_v59  ;;  %v1504_v25 = vpop.xlane.xlu0 %1503  ;;  %v1507_v26 = vpop.xlane.xlu1 %1506  ;;  %2946 = vmatprep.subr.mxu1 %v3181_v38 }
 0x52b   : > { %3141 = vrcp.f32 %v1504_v25 }
 0x52c   : > { %3143 = vrcp.f32 %v1507_v26  ;;  %2934 = vmatmul.mubr.msk.f32.vlgmr.msra.gmra.mrb[8].mxu0 %vm829_vm3, %v1518_v24 }
 0x52d   : > { %v3136_v27 = vpop.eup %3135  ;;  %2942 = vmatpush3.msra.mxu0 %v1829_v11  ;;  %2943 = vmatprep.mubr.msk.f32.mxu0 %vm3182_vm2, %v3181_v38 }
 0x52e   : > { %v1519_v28 = vmul.f32 %v3136_v27, %v3120_v63  ;;  %2951 = vmatprep.subr.mxu0 %v3181_v38  ;;  %v1981_v33 = vpop.permute.xlu0 %1980  ;;  %v2057_v35 = vpop.permute.xlu1 %2056 }
 0x530   : > { %2939 = vmatmul.mubr.msk.f32.vlgmr.msra.gmra.mrb[14].mxu1 %vm829_vm3, %v1519_v28  ;;  %v2302_v28 = vld [vmem:[%s3324_s3] sm:$0xff] }
 0x531   : > { %v3138_v29 = vpop.eup %3137  ;;  %2947 = vmatpush3.msra.mxu1 %v1905_v52  ;;  %2948 = vmatprep.mubr.msk.f32.mxu1 %vm3182_vm2, %v3181_v38 }
 0x532   : > { %v3140_v30 = vpop.eup %3139  ;;  %v1520_v31 = vmul.f32 %v3138_v29, %v3124_v4  ;;  %2956 = vmatprep.subr.mxu1 %v3181_v38  ;;  %v2303_v29 = vld [vmem:[%s3324_s3 + $0x8] sm:$0xff] }
 0x533   : > { %v1521_v32 = vmul.f32 %v3140_v30, %v3122_v1  ;;  %v3034_v30 = vpack.c.bf16 %v2303_v29, %v2302_v28 }
 0x534   : > { %2944 = vmatmul.mubr.msk.f32.vlgmr.msra.gmra.mrb[10].mxu0 %vm829_vm3, %v1520_v31  ;;  %v2304_v31 = vld [vmem:[%s3324_s3 + $0x10] sm:$0xff] }
 0x535   : > { %v3142_v34 = vpop.eup %3141  ;;  %2949 = vmatmul.mubr.msk.f32.vlgmr.msra.gmra.mrb[16].mxu1 %vm829_vm3, %v1521_v32  ;;  %2952 = vmatpush3.msra.mxu0 %v1981_v33  ;;  %v2305_v32 = vld [vmem:[%s3324_s3 + $0x18] sm:$0xff] }
 0x536   : > { %v3144_v36 = vpop.eup %3143  ;;  %v1522_v37 = vmul.f32 %v3142_v34, %v3128_v8  ;;  %2957 = vmatpush3.msra.mxu1 %v2057_v35  ;;  %2953 = vmatprep.mubr.msk.f32.mxu0 %vm3182_vm2, %v3181_v38  ;;  %v3038_v33 = vpack.c.bf16 %v2305_v32, %v2304_v31 }
 0x537   : > { %v1523_v39 = vmul.f32 %v3144_v36, %v3497_v7  ;;  %2958 = vmatprep.mubr.msk.f32.mxu1 %vm3182_vm2, %v3181_v38  ;;  %3027 = vmatprep.subr.bf16.mxu1 %v3026_v44 }
 0x538   : > { %2954 = vmatmul.mubr.msk.f32.vlgmr.msra.gmra.mrb[12].mxu0 %vm829_vm3, %v1522_v37 }
 0x539   : > { %2959 = vmatmul.mubr.msk.f32.vlgmr.msra.gmra.mrb[18].mxu1 %vm829_vm3, %v1523_v39 }
 0x53a   : > { %3029 = vmatpush3.bf16.msra.mxu1 %v3026_v44  ;;  %v2788_v44 = vld [vmem:[%s625_s22] ss:$0 sm:$0xff] }
 0x53b   : > { %3031 = vmatprep.subr.bf16.mxu1 %v3030_v50 }
 0x53e   : > { %3033 = vmatpush3.bf16.msra.mxu1 %v3030_v50 }
 0x53f   : > { %3035 = vmatprep.subr.bf16.mxu1 %v3034_v30 }
 0x5a6   : > { %v1596_v40 = vpop.f32.mrb[6].mxu0 }
 0x5a7   : > { %v2925_v41 = vpop.f32.mrb[7].mxu0 }
 0x5fb   : > { %v1672_v45 = vpop.f32.mrb[12].mxu1 }
 0x5fc   : > { %2133 = vrot.lane.b32.xlu0 %v1672_v45, %s3188_s14  ;;  %v2930_v46 = vpop.f32.mrb[13].mxu1 }
 0x5ff   : > { %v1748_v51 = vpop.f32.mrb[8].mxu0 }
 0x600   : > { %2137 = vrot.lane.b32.xlu1 %v1748_v51, %s3189_s27  ;;  %v2935_v38 = vpop.f32.mrb[9].mxu0 }
 0x601   : > { %v2448_v38 = vld [vmem:[%s3334_s16] sm:$0xff] }
 0x603   : > { %v1824_v53 = vpop.f32.mrb[14].mxu1 }
 0x604   : > { %2141 = vrot.lane.b32.xlu1 %v1824_v53, %s3190_s15  ;;  %v2940_v54 = vpop.f32.mrb[15].mxu1  ;;  %v2449_v53 = vld [vmem:[%s3334_s16 + $0x8] sm:$0xff] }
 0x605   : > { %v3042_v54 = vpack.c.bf16 %v2449_v53, %v2448_v38 }
 0x607   : > { %v1900_v55 = vpop.f32.mrb[10].mxu0  ;;  %3043 = vmatprep.subr.bf16.mxu0 %v3042_v54 }
 0x608   : > { %v1976_v56 = vpop.f32.mrb[16].mxu1  ;;  %v2945_v57 = vpop.f32.mrb[11].mxu0  ;;  %3045 = vmatpush3.bf16.msra.mxu0 %v3042_v54 }
 0x609   : > { %2150 = vrot.lane.b32.xlu0 %v1976_v56, %s3188_s14  ;;  %v2950_v58 = vpop.f32.mrb[17].mxu1  ;;  %v2451_v56 = vld [vmem:[%s3334_s16 + $0x18] sm:$0xff] }
 0x60a   : > { %v2452_v58 = vld [vmem:[%s3334_s16 + $0x20] sm:$0xff] }
 0x60b   : > { %v2052_v59 = vpop.f32.mrb[12].mxu0 }
 0x60c   : > { %v2128_v60 = vpop.f32.mrb[18].mxu1  ;;  %v2955_v61 = vpop.f32.mrb[13].mxu0 }
 0x60d   : > { %2154 = vrot.lane.b32.xlu0 %v2052_v59, %s3189_s27  ;;  %2158 = vrot.lane.b32.xlu1 %v2128_v60, %s3190_s15  ;;  %v2960_v62 = vpop.f32.mrb[19].mxu1  ;;  %v2453_v59 = vld [vmem:[%s3334_s16 + $0x28] sm:$0xff]  ;;  %v2454_v61 = vld [vmem:[%s3334_s16 + $0x30] sm:$0xff] }
 0x60e   : > { %v3050_v60 = vpack.c.bf16 %v2453_v59, %v2452_v58  ;;  %v2455_v62 = vld [vmem:[%s3334_s16 + $0x38] sm:$0xff]  ;;  %v3191_v58 = vmov -1.0  }
 0x66e   : > { %v2134_v63 = vpop.permute.xlu0 %2133 }
 0x66f   : > { %v2144_v1 = vsel %vm829_vm3, %v1596_v40, %v2134_v63  ;;  %v3054_v63 = vpack.c.bf16 %v2455_v62, %v2454_v61 }
 0x672   : > { %v2138_v0 = vpop.permute.xlu1 %2137 }
 0x673   : > { %v2146_v4 = vsel %vm2145_vm4, %v2144_v1, %v2138_v0  ;;  %v2456_v0 = vld [vmem:[%s3334_s16 + $0x40] sm:$0xff]  ;;  %v2457_v1 = vld [vmem:[%s3334_s16 + $0x48] sm:$0xff] }
 0x676   : > { %v2142_v5 = vpop.permute.xlu1 %2141 }
 0x677   : > { %v2148_v6 = vsel %vm2147_vm5, %v2146_v4, %v2142_v5  ;;  %v3058_v4 = vpack.c.bf16 %v2457_v1, %v2456_v0  ;;  %v2458_v5 = vld [vmem:[%s3334_s16 + $0x50] sm:$0xff] }
 0x678   : > { %2969 = vmatprep.mubr.msk.f32.mxu1 %vm661_vm1, %v2148_v6  ;;  %v2459_v6 = vld [vmem:[%s3334_s16 + $0x58] sm:$0xff] }
 0x67b   : > { %v2151_v7 = vpop.permute.xlu0 %2150 }
 0x67c   : > { %v2161_v8 = vsel %vm829_vm3, %v1900_v55, %v2151_v7  ;;  %v2450_v55 = vld [vmem:[%s3334_s16 + $0x10] sm:$0xff]  ;;  %v3062_v7 = vpack.c.bf16 %v2459_v6, %v2458_v5 }
 0x67d   : > { %v3046_v57 = vpack.c.bf16 %v2451_v56, %v2450_v55 }
 0x67f   : > { %v2155_v9 = vpop.permute.xlu0 %2154  ;;  %v2159_v10 = vpop.permute.xlu1 %2158  ;;  %3047 = vmatprep.subr.bf16.mxu0 %v3046_v57 }
 0x680   : > { %v2162_v11 = vsel %vm2145_vm4, %v2161_v8, %v2155_v9  ;;  %3049 = vmatpush3.bf16.msra.mxu0 %v3046_v57  ;;  %v2460_v8 = vld [vmem:[%s3334_s16 + $0x60] sm:$0xff]  ;;  %v2461_v9 = vld [vmem:[%s3334_s16 + $0x68] sm:$0xff] }
 0x681   : > { %v2163_v12 = vsel %vm2147_vm5, %v2162_v11, %v2159_v10  ;;  %3051 = vmatprep.subr.bf16.mxu0 %v3050_v60  ;;  %v3066_v10 = vpack.c.bf16 %v2461_v9, %v2460_v8  ;;  %v2462_v11 = vld [vmem:[%s3334_s16 + $0x70] sm:$0xff]  ;;  %v2792_v8 = vld [vmem:[%s641_s20] ss:$0 sm:$0xff] }
 0x682   : > { %2970 = vmatmul.mubr.msk.f32.vlgmr.msra.gmra.mrb[20].mxu1 %vm661_vm1, %v2163_v12  ;;  %v2463_v12 = vld [vmem:[%s3334_s16 + $0x78] sm:$0xff] }
 0x683   : > { %3037 = vmatpush3.bf16.msra.mxu1 %v3034_v30 }
 0x684   : > { %3039 = vmatprep.subr.bf16.mxu1 %v3038_v33  ;;  %3053 = vmatpush3.bf16.msra.mxu0 %v3050_v60 }
 0x685   : > { %3055 = vmatprep.subr.bf16.mxu0 %v3054_v63 }
 0x687   : > { %3041 = vmatpush3.bf16.msra.mxu1 %v3038_v33 }
 0x688   : > { %3057 = vmatpush3.bf16.msra.mxu0 %v3054_v63 }
 0x689   : > { %3059 = vmatprep.subr.bf16.mxu0 %v3058_v4 }
 0x68c   : > { %3061 = vmatpush3.bf16.msra.mxu0 %v3058_v4 }
 0x68d   : > { %3063 = vmatprep.subr.bf16.mxu0 %v3062_v7 }
 0x690   : > { %3065 = vmatpush3.bf16.msra.mxu0 %v3062_v7 }
 0x691   : > { %3067 = vmatprep.subr.bf16.mxu0 %v3066_v10 }
 0x694   : > { %3069 = vmatpush3.bf16.msra.mxu0 %v3066_v10 }
 0x755   : > { %v2971_v14 = vpop.f32.mrb[20].mxu1 }
 0x756   : > { %v2253_v15 = vadd.f32 %v2971_v14, %v2784_v13  ;;  %v2247_v16 = vpop.f32.mrb[21].mxu1  ;;  %v2789_v14 = vld [vmem:[%s633_s5] ss:$0 sm:$0xff] }
 0x757   : > { %v2248_v52 = vadd.f32 %v2784_v13, %v2247_v16  ;;  %v3070_v13 = vpack.c.bf16 %v2463_v12, %v2462_v11 }
 0x758   : > { %v3546_v17 = vadd.f32 %v2253_v15, %v3349_v3 }
 0x759   : > { %v3549_v48 = vadd.f32 %v2248_v52, %v3347_v2  ;;  %3071 = vmatprep.subr.bf16.mxu0 %v3070_v13 }
 0x75a   : > { %v2263_v18 = vsel %vm661_vm1, %v3546_v17, 0.0  ;;  %3073 = vmatpush3.bf16.msra.mxu0 %v3070_v13 }
 0x75b   : > { %2264 = vadd.xlane.f32.xlu1 %v2263_v18  ;;  %v2260_v19 = vsel %vm661_vm1, %v3549_v48, 0.0 }
 0x75c   : > { %2261 = vadd.xlane.f32.xlu0 %v2260_v19 }
 0x7e8   : > { %v2265_v20 = vpop.xlane.xlu1 %2264 }
 0x7e9   : > { %v2267_v21 = vmul.f32 0.03125, %v2265_v20  ;;  %v2262_v22 = vpop.xlane.xlu0 %2261 }
 0x7ea   : > { %v2266_v3 = vmul.f32 0.03125, %v2262_v22 }
 0x7eb   : > { %v2269_v23 = vsub.f32 %v3546_v17, %v2267_v21 }
 0x7ec   : > { %v2268_v2 = vsub.f32 %v3549_v48, %v2266_v3 }
 0x7ed   : > { %v2271_v26 = vmul.f32 %v2269_v23, %v2269_v23 }
 0x7ee   : > { %v2270_v24 = vmul.f32 %v2268_v2, %v2268_v2 }
 0x7ef   : > { %v2275_v27 = vsel %vm661_vm1, %v2271_v26, 0.0 }
 0x7f0   : > { %v2272_v25 = vsel %vm661_vm1, %v2270_v24, 0.0 }
 0x7f1   : > { %2273 = vadd.xlane.f32.xlu0 %v2272_v25 }
 0x7f5   : > { %2276 = vadd.xlane.f32.xlu0 %v2275_v27 }
 0x87e   : > { %v2274_v34 = vpop.xlane.xlu0 %2273 }
 0x87f   : > { %v2278_v35 = vmul.f32 0.03125, %v2274_v34 }
 0x881   : > { %v2280_v36 = vadd.f32 1e-05, %v2278_v35 }
 0x882   : > { %v2277_v37 = vpop.xlane.xlu0 %2276 }
 0x883   : > { %3145 = vrsqrt.f32 %v2280_v36  ;;  %v2279_v39 = vmul.f32 0.03125, %v2277_v37 }
 0x885   : > { %v2281_v40 = vadd.f32 1e-05, %v2279_v39 }
 0x887   : > { %3147 = vrsqrt.f32 %v2281_v40 }
 0x88d   : > { %v3146_v41 = vpop.eup %3145 }
 0x88e   : > { %v2284_v43 = vmul.f32 %v3146_v41, %v2268_v2 }
 0x890   : > { %v2292_v45 = vmul.f32 %v2787_v42, %v2284_v43 }
 0x891   : > { %v3148_v46 = vpop.eup %3147 }
 0x892   : > { %v2285_v47 = vmul.f32 %v3148_v46, %v2269_v23  ;;  %v2300_v49 = vadd.f32 %v2788_v44, %v2292_v45 }
 0x894   : > { %v2293_v50 = vmul.f32 %v2787_v42, %v2285_v47  ;;  %2980 = vmatprep.mubr.msk.f32.mxu1 %vm661_vm1, %v2300_v49 }
 0x896   : > { %v2301_v51 = vadd.f32 %v2788_v44, %v2293_v50 }
 0x898   : > { %2981 = vmatmul.mubr.msk.f32.vlgmr.msra.gmra.mrb[22].mxu1 %vm661_vm1, %v2301_v51 }
 0x96b   : > { %v2982_v15 = vpop.f32.mrb[22].mxu1 }
 0x96c   : > { %v2391_v16 = vadd.f32 %v2982_v15, %v2789_v14  ;;  %v2385_v52 = vpop.f32.mrb[23].mxu1 }
 0x96d   : > { %v2386_v18 = vadd.f32 %v2789_v14, %v2385_v52 }
 0x96e   : > { %v2397_v19 = vmul.f32 0.70710677, %v2391_v16  ;;  %v2395_v5 = vmul.f32 0.5, %v2391_v16 }
 0x96f   : > { %v2396_v20 = vmul.f32 0.70710677, %v2386_v18  ;;  %v2394_v1 = vmul.f32 0.5, %v2386_v18 }
 0x970   : > { %v2403_v21 = vand.u32 2147483647, %v2397_v19  ;;  %vm2399_vm6 = vcmp.ge.f32.partialorder %v2397_v19, 0.0 }
 0x971   : > { %v2402_v22 = vand.u32 2147483647, %v2396_v20  ;;  %vm2398_vm7 = vcmp.ge.f32.partialorder %v2396_v20, 0.0  ;;  %v2401_v59 = vsel %vm2399_vm6, 1.0, %v3191_v58 }
 0x972   : > { %v2405_v3 = vmul.f32 0.3275911, %v2403_v21  ;;  %v2431_v25 = vsub.f32 0.0, %v2403_v21  ;;  %v2400_v62 = vsel %vm2398_vm7, 1.0, %v3191_v58 }
 0x973   : > { %v2404_v23 = vmul.f32 0.3275911, %v2402_v22  ;;  %v2430_v26 = vsub.f32 0.0, %v2402_v22 }
 0x974   : > { %v2407_v2 = vadd.f32 1.0, %v2405_v3  ;;  %v2433_v28 = vmul.f32 %v2431_v25, %v2403_v21 }
 0x975   : > { %v2406_v24 = vadd.f32 1.0, %v2404_v23  ;;  %v2432_v31 = vmul.f32 %v2430_v26, %v2402_v22 }
 0x976   : > { %3149 = vrcp.f32 %v2407_v2  ;;  %v2436_v34 = vmul.f32 1.442695, %v2433_v28 }
 0x977   : > { %3151 = vrcp.f32 %v2406_v24  ;;  %v2434_v37 = vmul.f32 1.442695, %v2432_v31 }
 0x978   : > { %3153 = vpow2.f32 %v2436_v34 }
 0x979   : > { %3155 = vpow2.f32 %v2434_v37 }
 0x980   : > { %v3150_v27 = vpop.eup %3149 }
 0x981   : > { %v3152_v29 = vpop.eup %3151  ;;  %v2413_v30 = vmul.f32 1.0614054, %v3150_v27 }
 0x982   : > { %v2412_v32 = vmul.f32 1.0614054, %v3152_v29  ;;  %v3154_v38 = vpop.eup %3153 }
 0x983   : > { %v2415_v33 = vadd.f32 -1.4531521, %v2413_v30  ;;  %v3156_v54 = vpop.eup %3155 }
 0x984   : > { %v2414_v35 = vadd.f32 -1.4531521, %v2412_v32 }
 0x985   : > { %v2417_v36 = vmul.f32 %v3150_v27, %v2415_v33 }
 0x986   : > { %v2416_v39 = vmul.f32 %v3152_v29, %v2414_v35 }
 0x987   : > { %v2419_v40 = vadd.f32 1.4214138, %v2417_v36 }
 0x988   : > { %v2418_v41 = vadd.f32 1.4214138, %v2416_v39 }
 0x989   : > { %v2421_v42 = vmul.f32 %v3150_v27, %v2419_v40 }
 0x98a   : > { %v2420_v43 = vmul.f32 %v3152_v29, %v2418_v41 }
 0x98b   : > { %v2423_v44 = vadd.f32 -0.28449672, %v2421_v42 }
 0x98c   : > { %v2422_v45 = vadd.f32 -0.28449672, %v2420_v43 }
 0x98d   : > { %v2425_v46 = vmul.f32 %v3150_v27, %v2423_v44 }
 0x98e   : > { %v2424_v47 = vmul.f32 %v3152_v29, %v2422_v45 }
 0x98f   : > { %v2427_v49 = vadd.f32 0.2548296, %v2425_v46 }
 0x990   : > { %v2426_v50 = vadd.f32 0.2548296, %v2424_v47 }
 0x991   : > { %v2429_v51 = vmul.f32 %v3150_v27, %v2427_v49 }
 0x992   : > { %v2428_v53 = vmul.f32 %v3152_v29, %v2426_v50 }
 0x993   : > { %v2439_v55 = vmul.f32 %v3154_v38, %v2429_v51 }
 0x994   : > { %v2438_v56 = vmul.f32 %v3156_v54, %v2428_v53 }
 0x995   : > { %v2441_v57 = vsub.f32 1.0, %v2439_v55 }
 0x996   : > { %v2440_v60 = vsub.f32 1.0, %v2438_v56 }
 0x997   : > { %v2443_v61 = vmul.f32 %v2441_v57, %v2401_v59 }
 0x998   : > { %v2442_v63 = vmul.f32 %v2440_v60, %v2400_v62 }
 0x999   : > { %v2445_v0 = vadd.f32 1.0, %v2443_v61 }
 0x99a   : > { %v2444_v4 = vadd.f32 1.0, %v2442_v63 }
 0x99b   : > { %v2447_v7 = vmul.f32 %v2445_v0, %v2395_v5 }
 0x99c   : > { %v2446_v6 = vmul.f32 %v2444_v4, %v2394_v1 }
 0x99e   : > { %3015 = vmatprep.mubr.f32.mxu0 %v2446_v6 }
 0x99f   : > { %3016 = vmatmul.mubr.f32.vlgmr.msra.gmra.mrb[14].mxu0 %v2447_v7 }
 0xa72   : > { %v3017_v9 = vpop.f32.mrb[14].mxu0  ;;  %2553 = sbr.rel (%p2793_p6) target bundleno = 2681 (0xa79), region = 80 }
 0xa73   : > { %v2543_v10 = vadd.f32 %v3017_v9, %v2792_v8  ;;  %v2537_v11 = vpop.f32.mrb[15].mxu0 }
 0xa74   : > { %v2538_v12 = vadd.f32 %v2792_v8, %v2537_v11 }
 0xa75   : > { %v2547_v13 = vadd.f32 %v2543_v10, %v3546_v17 }
 0xa76   : > { %v2546_v14 = vadd.f32 %v2538_v12, %v3549_v48 }
 0xa77   : > { %2549 = vst.msk [vmem:[#allocation2 + $0x8] sm:$0xff] %vm661_vm1, %v2547_v13  ;;  %2555 = vst.msk [vmem:[%s3655_s29 + $0x8] sm:$0xff] (!%p2793_p6), %vm661_vm1, %v2547_v13 }
 0xa78   : > { %2548 = vst.msk [vmem:[#allocation2] sm:$0xff] %vm661_vm1, %v2546_v14  ;;  %2554 = vst.msk [vmem:[%s3655_s29] sm:$0xff] (!%p2793_p6), %vm661_vm1, %v2546_v14 }
 0xa79 PF: > { %s3656_s14 = sld [smem:[#allocation4_spill]]  ;;  %s3657_s25 = sld [smem:[#allocation3_spill]] }
 0xa7a   : > { %s3658_s26 = sld [smem:[#allocation5_spill]] }
 0xa7f   : > { %s23_s27 = sadd.s32 1, %s3656_s14  }
 0xa80   : > { %p20_p7 = scmp.ge.s32.totalorder %s23_s27, 4  }
 0xa82   :  { %22 = sbr.rel (!%p20_p7) target bundleno = 4 (0x4), region = 146 }

</bundles_post_ra>
